<compile_context>
chip_gen: v6e
topology: v6e:2x2x1
jax: 0.10.0
libtpu: 0.0.40
codegen_flags: <defaults>
</compile_context>

<pallas_src>
import functools

import jax
import jax.numpy as jnp
import numpy as np
from jax import lax
from jax.experimental import pallas as pl
from jax.experimental.pallas import tpu as pltpu

EPS = 1e-5


def _round_up(v, m):
    return (v + m - 1) // m * m


def _basic_block_kernel(mask_ref, x_ref, w1_ref, w2_ref, g1_ref, b1_ref,
                        g2_ref, b2_ref, out_ref, patches_ref, *, H, W, Cpad):
    N = x_ref.shape[1]
    inv_n = jnp.float32(1.0 / N)
    x = x_ref[...]                                   # (Cpad, N) f32, lane-dense

    # (lane-roll shift, mask row) for the 9 taps.  Conv "same" zero padding is
    # realized by masking lanes that wrapped across an image/batch border; the
    # 0/1 masks are precomputed host-side and shared by both convs.
    taps = []
    mi = 0
    for ky in range(3):
        for kx in range(3):
            dy, dx = ky - 1, kx - 1
            if dy == 0 and dx == 0:
                taps.append((0, None))
            else:
                taps.append(((-(dy * W + dx)) % N, mi))
                mi += 1

    def conv3x3(a, w_ref):
        # im2col slab (9*Cpad, N): 9 masked lane-rolls written tap-by-tap into
        # a 16-sublane-aligned bf16 scratch, then a single MXU matmul
        # (Cpad, 9*Cpad) @ (9*Cpad, N) with f32 accumulation.
        for t, (shift, m) in enumerate(taps):
            if m is None:
                tap = a
            else:
                tap = pltpu.roll(a, shift, axis=1) * mask_ref[pl.ds(m, 1), :]
            patches_ref[pl.ds(t * Cpad, Cpad), :] = tap.astype(jnp.bfloat16)
        return jnp.dot(w_ref[...], patches_ref[...],
                       preferred_element_type=jnp.float32)

    def bn(y, g_ref, b_ref):
        # Training-mode BatchNorm2d (biased batch stats over N = B*H*W) folded
        # into a per-channel scale/shift; moments in a single traversal.
        s1 = jnp.sum(y, axis=1, keepdims=True)
        s2 = jnp.sum(y * y, axis=1, keepdims=True)
        mean = s1 * inv_n
        var = jnp.maximum(s2 * inv_n - mean * mean, 0.0)
        scale = g_ref[...] * lax.rsqrt(var + EPS)
        shift = b_ref[...] - mean * scale
        return y * scale + shift

    y1 = jnp.maximum(bn(conv3x3(x, w1_ref), g1_ref, b1_ref), 0.0)
    y2 = bn(conv3x3(y1, w2_ref), g2_ref, b2_ref)
    # identity residual (downsample=None, stride=1) + final ReLU
    out_ref[...] = jnp.maximum(y2 + x, 0.0).astype(out_ref.dtype)


def basic_block_pallas(x_nchw, params):
    """x_nchw: (B, Cin, H, W) float32.  params in PyTorch layout (OIHW weights)."""
    w1, g1, b1, w2, g2, b2 = params
    B, Cin, H, W = x_nchw.shape
    C = w1.shape[0]
    assert Cin == C, "identity residual requires inplanes == planes, stride=1"
    N = B * H * W
    # Pad channels to a multiple of 16: f32 activations stay 8-sublane aligned
    # and bf16 im2col blocks land on full 16-sublane packed vregs.
    Cpad = _round_up(C, 16)

    # Lane-dense slab layout: channels on sublanes, flattened (B,H,W) on lanes.
    x2d = jnp.transpose(x_nchw, (1, 0, 2, 3)).reshape(C, N)
    x2d = jnp.pad(x2d, ((0, Cpad - C), (0, 0)))

    def prep_w(w):
        # (Cout,Cin,3,3) -> zero-pad channels -> (Cout_p,ky,kx,Cin_p)
        # -> (Cout_p, 9*Cin_p); bf16 for the native MXU path.
        wp = jnp.pad(w, ((0, Cpad - C), (0, Cpad - C), (0, 0), (0, 0)))
        return (jnp.transpose(wp, (0, 2, 3, 1))
                .reshape(Cpad, 9 * Cpad).astype(jnp.bfloat16))

    def prep_v(v):
        return jnp.pad(v.reshape(C, 1).astype(jnp.float32),
                       ((0, Cpad - C), (0, 0)))

    # Precomputed 0/1 border masks for the 8 off-centre taps (shared by both convs).
    ii = np.arange(N)
    rr = (ii // W) % H
    cc = ii % W
    masks = []
    for ky in range(3):
        for kx in range(3):
            dy, dx = ky - 1, kx - 1
            if dy == 0 and dx == 0:
                continue
            masks.append(((rr + dy >= 0) & (rr + dy < H) &
                          (cc + dx >= 0) & (cc + dx < W)).astype(np.float32))
    mask_arr = jnp.asarray(np.stack(masks, axis=0))           # (8, N)

    # Explicit VMEM budget (default scoped limit is well below physical).
    est = (4 * Cpad * N * 4            # x slab, conv outputs, output
           + 9 * Cpad * N * 2          # bf16 im2col scratch
           + 2 * Cpad * 9 * Cpad * 2   # bf16 weights
           + 8 * N * 4)                # masks
    vmem_limit = int(min(64 * 1024 * 1024, max(32 * 1024 * 1024, 4 * est)))

    vmem = pl.BlockSpec(memory_space=pltpu.MemorySpace.VMEM)
    out2d = pl.pallas_call(
        functools.partial(_basic_block_kernel, H=H, W=W, Cpad=Cpad),
        out_shape=jax.ShapeDtypeStruct((Cpad, N), x_nchw.dtype),
        in_specs=[vmem] * 8,
        out_specs=vmem,
        scratch_shapes=[pltpu.VMEM((9 * Cpad, N), jnp.bfloat16)],
        compiler_params=pltpu.CompilerParams(vmem_limit_bytes=vmem_limit),
    )(mask_arr, x2d, prep_w(w1), prep_w(w2),
      prep_v(g1), prep_v(b1), prep_v(g2), prep_v(b2))
    return jnp.transpose(out2d[:C].reshape(C, B, H, W), (1, 0, 2, 3))   # NCHW


def basic_block_reference(x_nchw, params):
    """Pure-JAX f32 reference mirroring the PyTorch forward (training-mode BN)."""
    w1, g1, b1, w2, g2, b2 = params

    def conv(x, w):
        return lax.conv_general_dilated(
            x, w, window_strides=(1, 1), padding=((1, 1), (1, 1)),
            dimension_numbers=("NCHW", "OIHW", "NCHW"),
            precision=lax.Precision.HIGHEST)

    def bn(y, g, b):
        mean = jnp.mean(y, axis=(0, 2, 3), keepdims=True)
        var = jnp.mean(jnp.square(y - mean), axis=(0, 2, 3), keepdims=True)
        return ((y - mean) * lax.rsqrt(var + EPS) * g.reshape(1, -1, 1, 1)
                + b.reshape(1, -1, 1, 1))

    out = jax.nn.relu(bn(conv(x_nchw, w1), g1, b1))
    out = bn(conv(out, w2), g2, b2) + x_nchw
    return jax.nn.relu(out)


if __name__ == "__main__":
    B, C, H, W = 2, 4, 16, 16          # inplanes = planes = 4, stride = 1
    key = jax.random.PRNGKey(0)
    kx, kw1, kw2, kg1, kb1, kg2, kb2 = jax.random.split(key, 7)

    x = jax.random.normal(kx, (B, C, H, W), jnp.float32)
    w1 = 0.1 * jax.random.normal(kw1, (C, C, 3, 3), jnp.float32)   # conv1 weight
    w2 = 0.1 * jax.random.normal(kw2, (C, C, 3, 3), jnp.float32)   # conv2 weight
    g1 = 1.0 + 0.1 * jax.random.normal(kg1, (C,), jnp.float32)     # bn1 gamma
    b1 = 0.1 * jax.random.normal(kb1, (C,), jnp.float32)           # bn1 beta
    g2 = 1.0 + 0.1 * jax.random.normal(kg2, (C,), jnp.float32)     # bn2 gamma
    b2 = 0.1 * jax.random.normal(kb2, (C,), jnp.float32)           # bn2 beta
    params = (w1, g1, b1, w2, g2, b2)

    out = jax.block_until_ready(basic_block_pallas(x, params))
    ref = jax.block_until_ready(basic_block_reference(x, params))

    assert out.shape == (B, C, H, W), out.shape
    # Tolerance reflects the deliberate bf16 cast at the MXU boundary.
    np.testing.assert_allclose(np.asarray(out), np.asarray(ref),
                               rtol=2e-2, atol=2e-2)
    print("KERNEL_OK")
</pallas_src>

<mosaic_0001>
module attributes {stable_mosaic.version = 11 : i64} {
  func.func @_basic_block_kernel(%arg0: memref<8x512xf32, #tpu.memory_space<vmem>>, %arg1: memref<16x512xf32, #tpu.memory_space<vmem>>, %arg2: memref<16x144xbf16, #tpu.memory_space<vmem>>, %arg3: memref<16x144xbf16, #tpu.memory_space<vmem>>, %arg4: memref<16x1xf32, #tpu.memory_space<vmem>>, %arg5: memref<16x1xf32, #tpu.memory_space<vmem>>, %arg6: memref<16x1xf32, #tpu.memory_space<vmem>>, %arg7: memref<16x1xf32, #tpu.memory_space<vmem>>, %arg8: memref<16x512xf32, #tpu.memory_space<vmem>>, %arg9: memref<144x512xbf16, #tpu.memory_space<vmem>>) attributes {dimension_semantics = [], scalar_prefetch = 0 : i64, scratch_operands = 1 : i64, tpu.core_type = #tpu.core_type<tc>} {
    %c0 = arith.constant 0 : index
    %c0_0 = arith.constant 0 : index
    %0 = vector.load %arg1[%c0, %c0_0] : memref<16x512xf32, #tpu.memory_space<vmem>>, vector<16x512xf32>
    %c17_i32 = arith.constant 17 : i32
    %1 = tpu.dynamic_rotate %0 by %c17_i32 dim 1 : vector<16x512xf32>, i32 -> vector<16x512xf32>
    %c0_1 = arith.constant 0 : index
    %c0_2 = arith.constant 0 : index
    %2 = vector.load %arg0[%c0_1, %c0_2] : memref<8x512xf32, #tpu.memory_space<vmem>>, vector<1x512xf32>
    %3 = vector.broadcast %2 : vector<1x512xf32> to vector<16x512xf32>
    %4 = arith.mulf %1, %3 : vector<16x512xf32>
    %5 = arith.truncf %4 : vector<16x512xf32> to vector<16x512xbf16>
    %c0_3 = arith.constant 0 : index
    %c0_4 = arith.constant 0 : index
    %6 = vector.load %arg9[%c0_3, %c0_4] : memref<144x512xbf16, #tpu.memory_space<vmem>>, vector<16x512xbf16>
    tpu.vector_store %arg9[%c0_3, %c0_4], %5 {strides = array<i32>} : memref<144x512xbf16, #tpu.memory_space<vmem>>, vector<16x512xbf16>,
    %c16_i32 = arith.constant 16 : i32
    %7 = tpu.dynamic_rotate %0 by %c16_i32 dim 1 : vector<16x512xf32>, i32 -> vector<16x512xf32>
    %c1 = arith.constant 1 : index
    %c0_5 = arith.constant 0 : index
    %8 = vector.load %arg0[%c1, %c0_5] : memref<8x512xf32, #tpu.memory_space<vmem>>, vector<1x512xf32>
    %9 = vector.broadcast %8 : vector<1x512xf32> to vector<16x512xf32>
    %10 = arith.mulf %7, %9 : vector<16x512xf32>
    %11 = arith.truncf %10 : vector<16x512xf32> to vector<16x512xbf16>
    %c16 = arith.constant 16 : index
    %c0_6 = arith.constant 0 : index
    %12 = vector.load %arg9[%c16, %c0_6] : memref<144x512xbf16, #tpu.memory_space<vmem>>, vector<16x512xbf16>
    tpu.vector_store %arg9[%c16, %c0_6], %11 {strides = array<i32>} : memref<144x512xbf16, #tpu.memory_space<vmem>>, vector<16x512xbf16>,
    %c15_i32 = arith.constant 15 : i32
    %13 = tpu.dynamic_rotate %0 by %c15_i32 dim 1 : vector<16x512xf32>, i32 -> vector<16x512xf32>
    %c2 = arith.constant 2 : index
    %c0_7 = arith.constant 0 : index
    %14 = vector.load %arg0[%c2, %c0_7] : memref<8x512xf32, #tpu.memory_space<vmem>>, vector<1x512xf32>
    %15 = vector.broadcast %14 : vector<1x512xf32> to vector<16x512xf32>
    %16 = arith.mulf %13, %15 : vector<16x512xf32>
    %17 = arith.truncf %16 : vector<16x512xf32> to vector<16x512xbf16>
    %c32 = arith.constant 32 : index
    %c0_8 = arith.constant 0 : index
    %18 = vector.load %arg9[%c32, %c0_8] : memref<144x512xbf16, #tpu.memory_space<vmem>>, vector<16x512xbf16>
    tpu.vector_store %arg9[%c32, %c0_8], %17 {strides = array<i32>} : memref<144x512xbf16, #tpu.memory_space<vmem>>, vector<16x512xbf16>,
    %c1_i32 = arith.constant 1 : i32
    %19 = tpu.dynamic_rotate %0 by %c1_i32 dim 1 : vector<16x512xf32>, i32 -> vector<16x512xf32>
    %c3 = arith.constant 3 : index
    %c0_9 = arith.constant 0 : index
    %20 = vector.load %arg0[%c3, %c0_9] : memref<8x512xf32, #tpu.memory_space<vmem>>, vector<1x512xf32>
    %21 = vector.broadcast %20 : vector<1x512xf32> to vector<16x512xf32>
    %22 = arith.mulf %19, %21 : vector<16x512xf32>
    %23 = arith.truncf %22 : vector<16x512xf32> to vector<16x512xbf16>
    %c48 = arith.constant 48 : index
    %c0_10 = arith.constant 0 : index
    %24 = vector.load %arg9[%c48, %c0_10] : memref<144x512xbf16, #tpu.memory_space<vmem>>, vector<16x512xbf16>
    tpu.vector_store %arg9[%c48, %c0_10], %23 {strides = array<i32>} : memref<144x512xbf16, #tpu.memory_space<vmem>>, vector<16x512xbf16>,
    %25 = arith.truncf %0 : vector<16x512xf32> to vector<16x512xbf16>
    %c64 = arith.constant 64 : index
    %c0_11 = arith.constant 0 : index
    %26 = vector.load %arg9[%c64, %c0_11] : memref<144x512xbf16, #tpu.memory_space<vmem>>, vector<16x512xbf16>
    tpu.vector_store %arg9[%c64, %c0_11], %25 {strides = array<i32>} : memref<144x512xbf16, #tpu.memory_space<vmem>>, vector<16x512xbf16>,
    %c511_i32 = arith.constant 511 : i32
    %27 = tpu.dynamic_rotate %0 by %c511_i32 dim 1 : vector<16x512xf32>, i32 -> vector<16x512xf32>
    %c4 = arith.constant 4 : index
    %c0_12 = arith.constant 0 : index
    %28 = vector.load %arg0[%c4, %c0_12] : memref<8x512xf32, #tpu.memory_space<vmem>>, vector<1x512xf32>
    %29 = vector.broadcast %28 : vector<1x512xf32> to vector<16x512xf32>
    %30 = arith.mulf %27, %29 : vector<16x512xf32>
    %31 = arith.truncf %30 : vector<16x512xf32> to vector<16x512xbf16>
    %c80 = arith.constant 80 : index
    %c0_13 = arith.constant 0 : index
    %32 = vector.load %arg9[%c80, %c0_13] : memref<144x512xbf16, #tpu.memory_space<vmem>>, vector<16x512xbf16>
    tpu.vector_store %arg9[%c80, %c0_13], %31 {strides = array<i32>} : memref<144x512xbf16, #tpu.memory_space<vmem>>, vector<16x512xbf16>,
    %c497_i32 = arith.constant 497 : i32
    %33 = tpu.dynamic_rotate %0 by %c497_i32 dim 1 : vector<16x512xf32>, i32 -> vector<16x512xf32>
    %c5 = arith.constant 5 : index
    %c0_14 = arith.constant 0 : index
    %34 = vector.load %arg0[%c5, %c0_14] : memref<8x512xf32, #tpu.memory_space<vmem>>, vector<1x512xf32>
    %35 = vector.broadcast %34 : vector<1x512xf32> to vector<16x512xf32>
    %36 = arith.mulf %33, %35 : vector<16x512xf32>
    %37 = arith.truncf %36 : vector<16x512xf32> to vector<16x512xbf16>
    %c96 = arith.constant 96 : index
    %c0_15 = arith.constant 0 : index
    %38 = vector.load %arg9[%c96, %c0_15] : memref<144x512xbf16, #tpu.memory_space<vmem>>, vector<16x512xbf16>
    tpu.vector_store %arg9[%c96, %c0_15], %37 {strides = array<i32>} : memref<144x512xbf16, #tpu.memory_space<vmem>>, vector<16x512xbf16>,
    %c496_i32 = arith.constant 496 : i32
    %39 = tpu.dynamic_rotate %0 by %c496_i32 dim 1 : vector<16x512xf32>, i32 -> vector<16x512xf32>
    %c6 = arith.constant 6 : index
    %c0_16 = arith.constant 0 : index
    %40 = vector.load %arg0[%c6, %c0_16] : memref<8x512xf32, #tpu.memory_space<vmem>>, vector<1x512xf32>
    %41 = vector.broadcast %40 : vector<1x512xf32> to vector<16x512xf32>
    %42 = arith.mulf %39, %41 : vector<16x512xf32>
    %43 = arith.truncf %42 : vector<16x512xf32> to vector<16x512xbf16>
    %c112 = arith.constant 112 : index
    %c0_17 = arith.constant 0 : index
    %44 = vector.load %arg9[%c112, %c0_17] : memref<144x512xbf16, #tpu.memory_space<vmem>>, vector<16x512xbf16>
    tpu.vector_store %arg9[%c112, %c0_17], %43 {strides = array<i32>} : memref<144x512xbf16, #tpu.memory_space<vmem>>, vector<16x512xbf16>,
    %c495_i32 = arith.constant 495 : i32
    %45 = tpu.dynamic_rotate %0 by %c495_i32 dim 1 : vector<16x512xf32>, i32 -> vector<16x512xf32>
    %c7 = arith.constant 7 : index
    %c0_18 = arith.constant 0 : index
    %46 = vector.load %arg0[%c7, %c0_18] : memref<8x512xf32, #tpu.memory_space<vmem>>, vector<1x512xf32>
    %47 = vector.broadcast %46 : vector<1x512xf32> to vector<16x512xf32>
    %48 = arith.mulf %45, %47 : vector<16x512xf32>
    %49 = arith.truncf %48 : vector<16x512xf32> to vector<16x512xbf16>
    %c128 = arith.constant 128 : index
    %c0_19 = arith.constant 0 : index
    %50 = vector.load %arg9[%c128, %c0_19] : memref<144x512xbf16, #tpu.memory_space<vmem>>, vector<16x512xbf16>
    tpu.vector_store %arg9[%c128, %c0_19], %49 {strides = array<i32>} : memref<144x512xbf16, #tpu.memory_space<vmem>>, vector<16x512xbf16>,
    %c0_20 = arith.constant 0 : index
    %c0_21 = arith.constant 0 : index
    %51 = vector.load %arg2[%c0_20, %c0_21] : memref<16x144xbf16, #tpu.memory_space<vmem>>, vector<16x144xbf16>
    %c0_22 = arith.constant 0 : index
    %c0_23 = arith.constant 0 : index
    %52 = vector.load %arg9[%c0_22, %c0_23] : memref<144x512xbf16, #tpu.memory_space<vmem>>, vector<144x512xbf16>
    %cst = arith.constant dense<0.000000e+00> : vector<16x512xf32>
    %53 = tpu.matmul %51, %52, %cst {dimension_numbers = #tpu.dot_dimension_numbers<[1], [0], [0], [1], [0, 0, 1, 1], [], []>} : vector<16x144xbf16>, vector<144x512xbf16>, vector<16x512xf32> -> vector<16x512xf32>
    %cst_24 = arith.constant dense<0.000000e+00> : vector<16xf32>
    %54 = vector.multi_reduction <add>, %53, %cst_24 [1] : vector<16x512xf32> to vector<16xf32>
    %55 = vector.shape_cast %54 : vector<16xf32> to vector<16x1xf32>
    %56 = arith.mulf %53, %53 : vector<16x512xf32>
    %cst_25 = arith.constant dense<0.000000e+00> : vector<16xf32>
    %57 = vector.multi_reduction <add>, %56, %cst_25 [1] : vector<16x512xf32> to vector<16xf32>
    %58 = vector.shape_cast %57 : vector<16xf32> to vector<16x1xf32>
    %cst_26 = arith.constant 0.001953125 : f32
    %59 = vector.broadcast %cst_26 : f32 to vector<16x1xf32>
    %60 = arith.mulf %55, %59 : vector<16x1xf32>
    %cst_27 = arith.constant 0.001953125 : f32
    %61 = vector.broadcast %cst_27 : f32 to vector<16x1xf32>
    %62 = arith.mulf %58, %61 : vector<16x1xf32>
    %63 = arith.mulf %60, %60 : vector<16x1xf32>
    %64 = arith.subf %62, %63 : vector<16x1xf32>
    %cst_28 = arith.constant 0.000000e+00 : f32
    %65 = vector.broadcast %cst_28 : f32 to vector<16x1xf32>
    %66 = arith.maximumf %64, %65 : vector<16x1xf32>
    %c0_29 = arith.constant 0 : index
    %c0_30 = arith.constant 0 : index
    %67 = vector.load %arg4[%c0_29, %c0_30] : memref<16x1xf32, #tpu.memory_space<vmem>>, vector<16x1xf32>
    %cst_31 = arith.constant 9.99999974E-6 : f32
    %68 = vector.broadcast %cst_31 : f32 to vector<16x1xf32>
    %69 = arith.addf %66, %68 : vector<16x1xf32>
    %70 = math.rsqrt %69 : vector<16x1xf32>
    %71 = arith.mulf %67, %70 : vector<16x1xf32>
    %c0_32 = arith.constant 0 : index
    %c0_33 = arith.constant 0 : index
    %72 = vector.load %arg5[%c0_32, %c0_33] : memref<16x1xf32, #tpu.memory_space<vmem>>, vector<16x1xf32>
    %73 = arith.mulf %60, %71 : vector<16x1xf32>
    %74 = arith.subf %72, %73 : vector<16x1xf32>
    %75 = vector.broadcast %71 : vector<16x1xf32> to vector<16x512xf32>
    %76 = arith.mulf %53, %75 : vector<16x512xf32>
    %77 = vector.broadcast %74 : vector<16x1xf32> to vector<16x512xf32>
    %78 = arith.addf %76, %77 : vector<16x512xf32>
    %cst_34 = arith.constant 0.000000e+00 : f32
    %79 = vector.broadcast %cst_34 : f32 to vector<16x512xf32>
    %80 = arith.maximumf %78, %79 : vector<16x512xf32>
    %c17_i32_35 = arith.constant 17 : i32
    %81 = tpu.dynamic_rotate %80 by %c17_i32_35 dim 1 : vector<16x512xf32>, i32 -> vector<16x512xf32>
    %c0_36 = arith.constant 0 : index
    %c0_37 = arith.constant 0 : index
    %82 = vector.load %arg0[%c0_36, %c0_37] : memref<8x512xf32, #tpu.memory_space<vmem>>, vector<1x512xf32>
    %83 = vector.broadcast %82 : vector<1x512xf32> to vector<16x512xf32>
    %84 = arith.mulf %81, %83 : vector<16x512xf32>
    %85 = arith.truncf %84 : vector<16x512xf32> to vector<16x512xbf16>
    %c0_38 = arith.constant 0 : index
    %c0_39 = arith.constant 0 : index
    %86 = vector.load %arg9[%c0_38, %c0_39] : memref<144x512xbf16, #tpu.memory_space<vmem>>, vector<16x512xbf16>
    tpu.vector_store %arg9[%c0_38, %c0_39], %85 {strides = array<i32>} : memref<144x512xbf16, #tpu.memory_space<vmem>>, vector<16x512xbf16>,
    %c16_i32_40 = arith.constant 16 : i32
    %87 = tpu.dynamic_rotate %80 by %c16_i32_40 dim 1 : vector<16x512xf32>, i32 -> vector<16x512xf32>
    %c1_41 = arith.constant 1 : index
    %c0_42 = arith.constant 0 : index
    %88 = vector.load %arg0[%c1_41, %c0_42] : memref<8x512xf32, #tpu.memory_space<vmem>>, vector<1x512xf32>
    %89 = vector.broadcast %88 : vector<1x512xf32> to vector<16x512xf32>
    %90 = arith.mulf %87, %89 : vector<16x512xf32>
    %91 = arith.truncf %90 : vector<16x512xf32> to vector<16x512xbf16>
    %c16_43 = arith.constant 16 : index
    %c0_44 = arith.constant 0 : index
    %92 = vector.load %arg9[%c16_43, %c0_44] : memref<144x512xbf16, #tpu.memory_space<vmem>>, vector<16x512xbf16>
    tpu.vector_store %arg9[%c16_43, %c0_44], %91 {strides = array<i32>} : memref<144x512xbf16, #tpu.memory_space<vmem>>, vector<16x512xbf16>,
    %c15_i32_45 = arith.constant 15 : i32
    %93 = tpu.dynamic_rotate %80 by %c15_i32_45 dim 1 : vector<16x512xf32>, i32 -> vector<16x512xf32>
    %c2_46 = arith.constant 2 : index
    %c0_47 = arith.constant 0 : index
    %94 = vector.load %arg0[%c2_46, %c0_47] : memref<8x512xf32, #tpu.memory_space<vmem>>, vector<1x512xf32>
    %95 = vector.broadcast %94 : vector<1x512xf32> to vector<16x512xf32>
    %96 = arith.mulf %93, %95 : vector<16x512xf32>
    %97 = arith.truncf %96 : vector<16x512xf32> to vector<16x512xbf16>
    %c32_48 = arith.constant 32 : index
    %c0_49 = arith.constant 0 : index
    %98 = vector.load %arg9[%c32_48, %c0_49] : memref<144x512xbf16, #tpu.memory_space<vmem>>, vector<16x512xbf16>
    tpu.vector_store %arg9[%c32_48, %c0_49], %97 {strides = array<i32>} : memref<144x512xbf16, #tpu.memory_space<vmem>>, vector<16x512xbf16>,
    %c1_i32_50 = arith.constant 1 : i32
    %99 = tpu.dynamic_rotate %80 by %c1_i32_50 dim 1 : vector<16x512xf32>, i32 -> vector<16x512xf32>
    %c3_51 = arith.constant 3 : index
    %c0_52 = arith.constant 0 : index
    %100 = vector.load %arg0[%c3_51, %c0_52] : memref<8x512xf32, #tpu.memory_space<vmem>>, vector<1x512xf32>
    %101 = vector.broadcast %100 : vector<1x512xf32> to vector<16x512xf32>
    %102 = arith.mulf %99, %101 : vector<16x512xf32>
    %103 = arith.truncf %102 : vector<16x512xf32> to vector<16x512xbf16>
    %c48_53 = arith.constant 48 : index
    %c0_54 = arith.constant 0 : index
    %104 = vector.load %arg9[%c48_53, %c0_54] : memref<144x512xbf16, #tpu.memory_space<vmem>>, vector<16x512xbf16>
    tpu.vector_store %arg9[%c48_53, %c0_54], %103 {strides = array<i32>} : memref<144x512xbf16, #tpu.memory_space<vmem>>, vector<16x512xbf16>,
    %105 = arith.truncf %80 : vector<16x512xf32> to vector<16x512xbf16>
    %c64_55 = arith.constant 64 : index
    %c0_56 = arith.constant 0 : index
    %106 = vector.load %arg9[%c64_55, %c0_56] : memref<144x512xbf16, #tpu.memory_space<vmem>>, vector<16x512xbf16>
    tpu.vector_store %arg9[%c64_55, %c0_56], %105 {strides = array<i32>} : memref<144x512xbf16, #tpu.memory_space<vmem>>, vector<16x512xbf16>,
    %c511_i32_57 = arith.constant 511 : i32
    %107 = tpu.dynamic_rotate %80 by %c511_i32_57 dim 1 : vector<16x512xf32>, i32 -> vector<16x512xf32>
    %c4_58 = arith.constant 4 : index
    %c0_59 = arith.constant 0 : index
    %108 = vector.load %arg0[%c4_58, %c0_59] : memref<8x512xf32, #tpu.memory_space<vmem>>, vector<1x512xf32>
    %109 = vector.broadcast %108 : vector<1x512xf32> to vector<16x512xf32>
    %110 = arith.mulf %107, %109 : vector<16x512xf32>
    %111 = arith.truncf %110 : vector<16x512xf32> to vector<16x512xbf16>
    %c80_60 = arith.constant 80 : index
    %c0_61 = arith.constant 0 : index
    %112 = vector.load %arg9[%c80_60, %c0_61] : memref<144x512xbf16, #tpu.memory_space<vmem>>, vector<16x512xbf16>
    tpu.vector_store %arg9[%c80_60, %c0_61], %111 {strides = array<i32>} : memref<144x512xbf16, #tpu.memory_space<vmem>>, vector<16x512xbf16>,
    %c497_i32_62 = arith.constant 497 : i32
    %113 = tpu.dynamic_rotate %80 by %c497_i32_62 dim 1 : vector<16x512xf32>, i32 -> vector<16x512xf32>
    %c5_63 = arith.constant 5 : index
    %c0_64 = arith.constant 0 : index
    %114 = vector.load %arg0[%c5_63, %c0_64] : memref<8x512xf32, #tpu.memory_space<vmem>>, vector<1x512xf32>
    %115 = vector.broadcast %114 : vector<1x512xf32> to vector<16x512xf32>
    %116 = arith.mulf %113, %115 : vector<16x512xf32>
    %117 = arith.truncf %116 : vector<16x512xf32> to vector<16x512xbf16>
    %c96_65 = arith.constant 96 : index
    %c0_66 = arith.constant 0 : index
    %118 = vector.load %arg9[%c96_65, %c0_66] : memref<144x512xbf16, #tpu.memory_space<vmem>>, vector<16x512xbf16>
    tpu.vector_store %arg9[%c96_65, %c0_66], %117 {strides = array<i32>} : memref<144x512xbf16, #tpu.memory_space<vmem>>, vector<16x512xbf16>,
    %c496_i32_67 = arith.constant 496 : i32
    %119 = tpu.dynamic_rotate %80 by %c496_i32_67 dim 1 : vector<16x512xf32>, i32 -> vector<16x512xf32>
    %c6_68 = arith.constant 6 : index
    %c0_69 = arith.constant 0 : index
    %120 = vector.load %arg0[%c6_68, %c0_69] : memref<8x512xf32, #tpu.memory_space<vmem>>, vector<1x512xf32>
    %121 = vector.broadcast %120 : vector<1x512xf32> to vector<16x512xf32>
    %122 = arith.mulf %119, %121 : vector<16x512xf32>
    %123 = arith.truncf %122 : vector<16x512xf32> to vector<16x512xbf16>
    %c112_70 = arith.constant 112 : index
    %c0_71 = arith.constant 0 : index
    %124 = vector.load %arg9[%c112_70, %c0_71] : memref<144x512xbf16, #tpu.memory_space<vmem>>, vector<16x512xbf16>
    tpu.vector_store %arg9[%c112_70, %c0_71], %123 {strides = array<i32>} : memref<144x512xbf16, #tpu.memory_space<vmem>>, vector<16x512xbf16>,
    %c495_i32_72 = arith.constant 495 : i32
    %125 = tpu.dynamic_rotate %80 by %c495_i32_72 dim 1 : vector<16x512xf32>, i32 -> vector<16x512xf32>
    %c7_73 = arith.constant 7 : index
    %c0_74 = arith.constant 0 : index
    %126 = vector.load %arg0[%c7_73, %c0_74] : memref<8x512xf32, #tpu.memory_space<vmem>>, vector<1x512xf32>
    %127 = vector.broadcast %126 : vector<1x512xf32> to vector<16x512xf32>
    %128 = arith.mulf %125, %127 : vector<16x512xf32>
    %129 = arith.truncf %128 : vector<16x512xf32> to vector<16x512xbf16>
    %c128_75 = arith.constant 128 : index
    %c0_76 = arith.constant 0 : index
    %130 = vector.load %arg9[%c128_75, %c0_76] : memref<144x512xbf16, #tpu.memory_space<vmem>>, vector<16x512xbf16>
    tpu.vector_store %arg9[%c128_75, %c0_76], %129 {strides = array<i32>} : memref<144x512xbf16, #tpu.memory_space<vmem>>, vector<16x512xbf16>,
    %c0_77 = arith.constant 0 : index
    %c0_78 = arith.constant 0 : index
    %131 = vector.load %arg3[%c0_77, %c0_78] : memref<16x144xbf16, #tpu.memory_space<vmem>>, vector<16x144xbf16>
    %c0_79 = arith.constant 0 : index
    %c0_80 = arith.constant 0 : index
    %132 = vector.load %arg9[%c0_79, %c0_80] : memref<144x512xbf16, #tpu.memory_space<vmem>>, vector<144x512xbf16>
    %cst_81 = arith.constant dense<0.000000e+00> : vector<16x512xf32>
    %133 = tpu.matmul %131, %132, %cst_81 {dimension_numbers = #tpu.dot_dimension_numbers<[1], [0], [0], [1], [0, 0, 1, 1], [], []>} : vector<16x144xbf16>, vector<144x512xbf16>, vector<16x512xf32> -> vector<16x512xf32>
    %cst_82 = arith.constant dense<0.000000e+00> : vector<16xf32>
    %134 = vector.multi_reduction <add>, %133, %cst_82 [1] : vector<16x512xf32> to vector<16xf32>
    %135 = vector.shape_cast %134 : vector<16xf32> to vector<16x1xf32>
    %136 = arith.mulf %133, %133 : vector<16x512xf32>
    %cst_83 = arith.constant dense<0.000000e+00> : vector<16xf32>
    %137 = vector.multi_reduction <add>, %136, %cst_83 [1] : vector<16x512xf32> to vector<16xf32>
    %138 = vector.shape_cast %137 : vector<16xf32> to vector<16x1xf32>
    %cst_84 = arith.constant 0.001953125 : f32
    %139 = vector.broadcast %cst_84 : f32 to vector<16x1xf32>
    %140 = arith.mulf %135, %139 : vector<16x1xf32>
    %cst_85 = arith.constant 0.001953125 : f32
    %141 = vector.broadcast %cst_85 : f32 to vector<16x1xf32>
    %142 = arith.mulf %138, %141 : vector<16x1xf32>
    %143 = arith.mulf %140, %140 : vector<16x1xf32>
    %144 = arith.subf %142, %143 : vector<16x1xf32>
    %cst_86 = arith.constant 0.000000e+00 : f32
    %145 = vector.broadcast %cst_86 : f32 to vector<16x1xf32>
    %146 = arith.maximumf %144, %145 : vector<16x1xf32>
    %c0_87 = arith.constant 0 : index
    %c0_88 = arith.constant 0 : index
    %147 = vector.load %arg6[%c0_87, %c0_88] : memref<16x1xf32, #tpu.memory_space<vmem>>, vector<16x1xf32>
    %cst_89 = arith.constant 9.99999974E-6 : f32
    %148 = vector.broadcast %cst_89 : f32 to vector<16x1xf32>
    %149 = arith.addf %146, %148 : vector<16x1xf32>
    %150 = math.rsqrt %149 : vector<16x1xf32>
    %151 = arith.mulf %147, %150 : vector<16x1xf32>
    %c0_90 = arith.constant 0 : index
    %c0_91 = arith.constant 0 : index
    %152 = vector.load %arg7[%c0_90, %c0_91] : memref<16x1xf32, #tpu.memory_space<vmem>>, vector<16x1xf32>
    %153 = arith.mulf %140, %151 : vector<16x1xf32>
    %154 = arith.subf %152, %153 : vector<16x1xf32>
    %155 = vector.broadcast %151 : vector<16x1xf32> to vector<16x512xf32>
    %156 = arith.mulf %133, %155 : vector<16x512xf32>
    %157 = vector.broadcast %154 : vector<16x1xf32> to vector<16x512xf32>
    %158 = arith.addf %156, %157 : vector<16x512xf32>
    %159 = arith.addf %158, %0 : vector<16x512xf32>
    %cst_92 = arith.constant 0.000000e+00 : f32
    %160 = vector.broadcast %cst_92 : f32 to vector<16x512xf32>
    %161 = arith.maximumf %159, %160 : vector<16x512xf32>
    %c0_93 = arith.constant 0 : index
    %c0_94 = arith.constant 0 : index
    %162 = vector.load %arg8[%c0_93, %c0_94] : memref<16x512xf32, #tpu.memory_space<vmem>>, vector<16x512xf32>
    tpu.vector_store %arg8[%c0_93, %c0_94], %161 {strides = array<i32>} : memref<16x512xf32, #tpu.memory_space<vmem>>, vector<16x512xf32>,
    return
  }
}

</mosaic_0001>

<bundles_post_ra>
// kernel: tpu_custom_call.1
= control target key start
LH: loop header
LB: loop body
LE: loop exit
PB: predicated region body
PF: predicated region fallthrough
CT: control target
= control target key end

     0   :  { %13 = vsyncpa [#allocation4], 0  ;;  %s3673_s0 = inlined_call_operand.hbm [shape: f32[8,512], index: 0, kind: input, shape index: {}]   ;;  %s3674_s1 = inlined_call_operand.vmem [shape: f32[16,512], index: 1, kind: input, shape index: {}]   ;;  %s3675_s2 = inlined_call_operand.hbm [shape: bf16[16,144], index: 2, kind: input, shape index: {}]   ;;  %s3676_s3 = inlined_call_operand.hbm [shape: bf16[16,144], index: 3, kind: input, shape index: {}]   ;;  %s3677_s4 = inlined_call_operand.vmem [shape: f32[16,1], index: 4, kind: input, shape index: {}]   ;;  %s3678_s5 = inlined_call_operand.vmem [shape: f32[16,1], index: 5, kind: input, shape index: {}]   ;;  %s3679_s6 = inlined_call_operand.vmem [shape: f32[16,1], index: 6, kind: input, shape index: {}]   ;;  %s3680_s7 = inlined_call_operand.vmem [shape: f32[16,1], index: 7, kind: input, shape index: {}]   ;;  %s3681_s8 = inlined_call_operand.hbm [shape: f32[16,512], index: 8, kind: output, shape index: {}]  }
   0x1   :  { %14 = vsyncpa [#allocation7], 0 }
   0x2   :  { %15 = vsyncpa [#allocation5], 0  ;;  %s2745_s27 = smov [#allocation6]  }
   0x3   :  { %s33_s28 = sshll.u32 %s2745_s27, 4  ;;  %s34_s28 = int_to_ptr.vmem [resolvable:$true] %s33_s28 }
   0x4   :  { %s2667_s29 = scalar_lea.vmem %s34_s28, 256  ;;  %p2672_p1 = scmp.lt.s32.totalorder %s34_s28, %s34_s28 }
   0x5   :  { %p2668_p0 = scmp.ne.s32.totalorder %s34_s28, %s2667_s29  ;;  %p2673_p2 = scmp.lt.s32.totalorder %s2667_s29, %s2667_s29 }
   0x7   :  { %p2674_p3 = por %p2673_p2, %p2672_p1 }
   0x9   :  { %p2675_p4 = pnand %p2674_p3, %p2668_p0 }
   0xb   :  { %2678 = shalt.err (!%p2675_p4)
}
   0xc   :  { %s2746_s30 = smov 128   ;;  %s2747_s9 = smov 8  }
   0xd   :  { %39 = dma.hbm_to_vmem [thread:$0]  %s3675_s2, 256, %s34_s28, [#allocation7], %s2746_s30, %s2746_s30, %s2747_s9  }
   0xe   :  { %s2748_s12 = smov [#allocation3]   ;;  %s2749_s14 = smov [#allocation8]  }
   0xf   :  { %s22_s13 = sshll.u32 %s2748_s12, 4  ;;  %s45_s15 = sshll.u32 %s2749_s14, 4  ;;  %s23_s13 = int_to_ptr.vmem [resolvable:$true] %s22_s13  ;;  %s46_s15 = int_to_ptr.vmem [resolvable:$true] %s45_s15 }
  0x10   :  { %s2687_s16 = scalar_lea.vmem %s23_s13, 512  ;;  %p2692_p6 = scmp.lt.s32.totalorder %s23_s13, %s23_s13 }
  0x11   :  { %p2688_p5 = scmp.ne.s32.totalorder %s23_s13, %s2687_s16  ;;  %p2693_p7 = scmp.lt.s32.totalorder %s2687_s16, %s2687_s16 }
  0x13   :  { %p2694_p8 = por %p2693_p7, %p2692_p6 }
  0x15   :  { %p2695_p9 = pnand %p2694_p8, %p2688_p5 }
  0x17   :  { %2698 = shalt.err (!%p2695_p9)
}
  0x18   :  { %25 = dma.hbm_to_vmem [thread:$0]  %s3673_s0, 512, %s23_s13, [#allocation4]  }
  0x19   :  { %s2707_s19 = scalar_lea.vmem %s46_s15, 256  ;;  %p2712_p11 = scmp.lt.s32.totalorder %s46_s15, %s46_s15 }
  0x1a   :  { %p2708_p10 = scmp.ne.s32.totalorder %s46_s15, %s2707_s19  ;;  %p2713_p12 = scmp.lt.s32.totalorder %s2707_s19, %s2707_s19 }
  0x1c   :  { %p2714_p13 = por %p2713_p12, %p2712_p11 }
  0x1e   :  { %p2715_p0 = pnand %p2714_p13, %p2708_p10 }
  0x20   :  { %2718 = shalt.err (!%p2715_p0)
}
  0x21   :  { %51 = dma.hbm_to_vmem [thread:$0]  %s3676_s3, 256, %s46_s15, [#allocation7], %s2746_s30, %s2746_s30, %s2747_s9  }
  0x22   :  { %2739 = dma.done.wait [#allocation4], 512  }
  0x23   :  { %2740 = vsyncadd [#allocation4], 4294966784 }
  0x24   :  { %2741 = dma.done.wait [#allocation7], 512  }
  0x25   :  { %2742 = vsyncadd [#allocation7], 4294966784  ;;  %v2819_v0 = vld [vmem:[%s3674_s1 + $0x10] sm:$0xff]  ;;  %v2824_v1 = vld [vmem:[%s3674_s1 + $0x8] sm:$0xff]  ;;  %s2750_s24 = smov 112   ;;  %s2751_s10 = smov 113   ;;  %v94_v8 = vlaneseq }
  0x26   :  { %619 = vrot.lane.b32.xlu1 %v2819_v0, %s2750_s24  ;;  %615 = vrot.lane.b32.xlu0 %v2824_v1, %s2750_s24  ;;  %v2833_v2 = vld [vmem:[%s3674_s1 + $0x30] sm:$0xff]  ;;  %v2838_v3 = vld [vmem:[%s3674_s1 + $0x28] sm:$0xff]  ;;  %s2752_s15 = smov 127   ;;  %s2753_s16 = smov 1   ;;  %vm1006_vm0 = vcmask 130048  }
  0x27   :  { %v2847_v4 = vld [vmem:[%s3674_s1 + $0x20] sm:$0xff]  ;;  %v2869_v6 = vld [vmem:[%s3674_s1 + $0x38] sm:$0xff]  ;;  %s2754_s17 = smov 15   ;;  %s2755_s18 = smov 16   ;;  %v108_v9 = vshrl.u32 %v94_v8, 7  ;;  %v2968_v10 = vand.u32 127, %v94_v8 }
  0x28   :  { %v2852_v5 = vld [vmem:[%s3674_s1] sm:$0xff]  ;;  %v2874_v7 = vld [vmem:[%s3674_s1 + $0x18] sm:$0xff]  ;;  %s2756_s19 = smov 17   ;;  %s2757_s2 = smov 111  }
  0x29   :  { %v2974_v11 = vsub.s32 1, %v108_v9  ;;  %v637_v12 = vld [vmem:[#allocation3 + $0x6] ss:$8 sm:$0xf]  ;;  %vm627_vm1 = vcmp.lt.s32.totalorder %v2968_v10, 112  ;;  %v2983_v16 = vsub.s32 0, %v108_v9 }
  0x2a   :  { %621 = vrot.lane.b32.xlu1 %v2833_v2, %s2750_s24  ;;  %617 = vrot.lane.b32.xlu0 %v2838_v3, %s2750_s24  ;;  %v2639_v13 = vld [vmem:[#allocation6 + $0x4] ss:$8 sps:$4 sm:$0xff]   ;;  %v3003_v36 = vsub.s32 2, %v108_v9  ;;  %v3005_v37 = vsub.s32 3, %v108_v9  ;;  %vm543_vm2 = vcmp.lt.s32.totalorder %v2968_v10, 113  ;;  %vm459_vm3 = vcmp.lt.s32.totalorder %v2968_v10, 127 }
  0x2b   :  { %2396 = vmatprep.mubr.msk.bf16.mxu0 %vm1006_vm0, %v2639_v13  ;;  %2397 = vmatprep.mubr.msk.bf16.mxu1 %vm1006_vm0, %v2639_v13  ;;  %v646_v17 = vrot.slane %v637_v12, %v2974_v11  ;;  %v642_v24 = vrot.slane %v637_v12, %v2983_v16  ;;  %v553_v32 = vld [vmem:[#allocation3 + $0x5] ss:$8 sm:$0xf]  ;;  %v469_v13 = vld [vmem:[#allocation3 + $0x4] ss:$8 sm:$0xf] }
  0x2c   :  { %v562_v38 = vrot.slane %v553_v32, %v2974_v11  ;;  %v654_v45 = vrot.slane %v637_v12, %v3005_v37  ;;  %v650_v46 = vrot.slane %v637_v12, %v3003_v36  ;;  %v558_v50 = vrot.slane %v553_v32, %v2983_v16 }
  0x2d   :  { %vm347_vm4 = vcmp.lt.s32.totalorder %v2968_v10, 1  ;;  %vm263_vm5 = vcmp.lt.s32.totalorder %v2968_v10, 15  ;;  %vm179_vm6 = vcmp.lt.s32.totalorder %v2968_v10, 16  ;;  %vm96_vm7 = vcmp.lt.s32.totalorder %v2968_v10, 17 }
  0x2e   :  { %613 = vrot.lane.b32.xlu1 %v2847_v4, %s2750_s24  ;;  %611 = vrot.lane.b32.xlu0 %v2852_v5, %s2750_s24  ;;  %vm711_vm8 = vcmp.lt.s32.totalorder %v2968_v10, 111 }
  0x32   :  { %533 = vrot.lane.b32.xlu1 %v2838_v3, %s2751_s10  ;;  %531 = vrot.lane.b32.xlu0 %v2824_v1, %s2751_s10 }
  0x36   :  { %537 = vrot.lane.b32.xlu1 %v2833_v2, %s2751_s10  ;;  %535 = vrot.lane.b32.xlu0 %v2819_v0, %s2751_s10 }
  0x3a   :  { %625 = vrot.lane.b32.xlu1 %v2869_v6, %s2750_s24  ;;  %623 = vrot.lane.b32.xlu0 %v2874_v7, %s2750_s24 }
  0x3e   :  { %529 = vrot.lane.b32.xlu1 %v2847_v4, %s2751_s10  ;;  %527 = vrot.lane.b32.xlu0 %v2852_v5, %s2751_s10 }
  0x42   :  { %449 = vrot.lane.b32.xlu1 %v2838_v3, %s2752_s15  ;;  %447 = vrot.lane.b32.xlu0 %v2824_v1, %s2752_s15 }
  0x46   :  { %453 = vrot.lane.b32.xlu1 %v2833_v2, %s2752_s15  ;;  %451 = vrot.lane.b32.xlu0 %v2819_v0, %s2752_s15 }
  0x4a   :  { %541 = vrot.lane.b32.xlu1 %v2869_v6, %s2751_s10  ;;  %539 = vrot.lane.b32.xlu0 %v2874_v7, %s2751_s10 }
  0x4e   :  { %445 = vrot.lane.b32.xlu1 %v2847_v4, %s2752_s15  ;;  %443 = vrot.lane.b32.xlu0 %v2852_v5, %s2752_s15 }
  0x52   :  { %457 = vrot.lane.b32.xlu1 %v2869_v6, %s2752_s15  ;;  %455 = vrot.lane.b32.xlu0 %v2874_v7, %s2752_s15 }
  0x56   :  { %333 = vrot.lane.b32.xlu1 %v2847_v4, %s2753_s16  ;;  %331 = vrot.lane.b32.xlu0 %v2852_v5, %s2753_s16 }
  0x5a   :  { %337 = vrot.lane.b32.xlu1 %v2838_v3, %s2753_s16  ;;  %335 = vrot.lane.b32.xlu0 %v2824_v1, %s2753_s16 }
  0x5e   :  { %345 = vrot.lane.b32.xlu1 %v2869_v6, %s2753_s16  ;;  %343 = vrot.lane.b32.xlu0 %v2874_v7, %s2753_s16 }
  0x62   :  { %249 = vrot.lane.b32.xlu1 %v2847_v4, %s2754_s17  ;;  %247 = vrot.lane.b32.xlu0 %v2852_v5, %s2754_s17 }
  0x66   :  { %253 = vrot.lane.b32.xlu1 %v2838_v3, %s2754_s17  ;;  %251 = vrot.lane.b32.xlu0 %v2824_v1, %s2754_s17 }
  0x6a   :  { %341 = vrot.lane.b32.xlu1 %v2833_v2, %s2753_s16  ;;  %339 = vrot.lane.b32.xlu0 %v2819_v0, %s2753_s16 }
  0x6e   :  { %261 = vrot.lane.b32.xlu1 %v2869_v6, %s2754_s17  ;;  %259 = vrot.lane.b32.xlu0 %v2874_v7, %s2754_s17 }
  0x72   :  { %165 = vrot.lane.b32.xlu1 %v2847_v4, %s2755_s18  ;;  %163 = vrot.lane.b32.xlu0 %v2852_v5, %s2755_s18 }
  0x76   :  { %169 = vrot.lane.b32.xlu1 %v2838_v3, %s2755_s18  ;;  %167 = vrot.lane.b32.xlu0 %v2824_v1, %s2755_s18 }
  0x7a   :  { %257 = vrot.lane.b32.xlu1 %v2833_v2, %s2754_s17  ;;  %255 = vrot.lane.b32.xlu0 %v2819_v0, %s2754_s17 }
  0x7e   :  { %177 = vrot.lane.b32.xlu1 %v2869_v6, %s2755_s18  ;;  %175 = vrot.lane.b32.xlu0 %v2874_v7, %s2755_s18 }
  0x82   :  { %80 = vrot.lane.b32.xlu1 %v2847_v4, %s2756_s19  ;;  %78 = vrot.lane.b32.xlu0 %v2852_v5, %s2756_s19 }
  0x86   :  { %84 = vrot.lane.b32.xlu1 %v2838_v3, %s2756_s19  ;;  %82 = vrot.lane.b32.xlu0 %v2824_v1, %s2756_s19 }
  0x8a   :  { %173 = vrot.lane.b32.xlu1 %v2833_v2, %s2755_s18  ;;  %171 = vrot.lane.b32.xlu0 %v2819_v0, %s2755_s18 }
  0x8e   :  { %92 = vrot.lane.b32.xlu1 %v2869_v6, %s2756_s19  ;;  %90 = vrot.lane.b32.xlu0 %v2874_v7, %s2756_s19 }
  0x92   :  { %88 = vrot.lane.b32.xlu1 %v2833_v2, %s2756_s19  ;;  %86 = vrot.lane.b32.xlu0 %v2819_v0, %s2756_s19 }
  0x96   :  { %701 = vrot.lane.b32.xlu1 %v2838_v3, %s2757_s2  ;;  %699 = vrot.lane.b32.xlu0 %v2824_v1, %s2757_s2 }
  0x98   :  { %v620_v14 = vpop.permute.xlu1 %619  ;;  %v616_v15 = vpop.permute.xlu0 %615 }
  0x99   :  { %v630_v18 = vsel %vm627_vm1, %v616_v15, %v620_v14 }
  0x9a   :  { %705 = vrot.lane.b32.xlu1 %v2833_v2, %s2757_s2  ;;  %703 = vrot.lane.b32.xlu0 %v2819_v0, %s2757_s2  ;;  %v660_v22 = vmul.f32 %v646_v17, %v630_v18  ;;  %v478_v18 = vrot.slane %v469_v13, %v2974_v11 }
  0x9c   :  { %v622_v19 = vpop.permute.xlu1 %621  ;;  %v618_v20 = vpop.permute.xlu0 %617 }
  0x9d   :  { %v631_v21 = vsel %vm627_vm1, %v618_v20, %v622_v19 }
  0x9e   :  { %697 = vrot.lane.b32.xlu1 %v2847_v4, %s2757_s2  ;;  %695 = vrot.lane.b32.xlu0 %v2852_v5, %s2757_s2  ;;  %v664_v23 = vmul.f32 %v646_v17, %v631_v21 }
  0xa0   :  { %v614_v25 = vpop.permute.xlu1 %613  ;;  %v612_v26 = vpop.permute.xlu0 %611  ;;  %v2575_v27 = vpack.c.bf16 %v664_v23, %v660_v22 }
  0xa1   :  { %v633_v28 = vsel %vm627_vm1, %v614_v25, %v618_v20  ;;  %v632_v29 = vsel %vm627_vm1, %v612_v26, %v616_v15 }
  0xa2   :  { %709 = vrot.lane.b32.xlu1 %v2869_v6, %s2757_s2  ;;  %1010 = vmatprep.subr.bf16.mxu0 %v2575_v27  ;;  %v659_v30 = vmul.f32 %v642_v24, %v632_v29  ;;  %v663_v31 = vmul.f32 %v642_v24, %v633_v28 }
  0xa3   :  { %707 = vrot.lane.b32.xlu0 %v2874_v7, %s2757_s2 }
  0xa4   :  { %v534_v33 = vpop.permute.xlu1 %533  ;;  %v532_v34 = vpop.permute.xlu0 %531  ;;  %v2574_v35 = vpack.c.bf16 %v663_v31, %v659_v30  ;;  %v474_v30 = vrot.slane %v469_v13, %v2983_v16 }
  0xa6   :  { %1011 = vmatpush1.bf16.msra.mxu0 %v2574_v35 }
  0xa8   :  { %v538_v39 = vpop.permute.xlu1 %537  ;;  %v536_v40 = vpop.permute.xlu0 %535 }
  0xa9   :  { %v547_v41 = vsel %vm543_vm2, %v534_v33, %v538_v39  ;;  %v546_v42 = vsel %vm543_vm2, %v532_v34, %v536_v40 }
  0xaa   :  { %v580_v43 = vmul.f32 %v562_v38, %v547_v41  ;;  %v576_v44 = vmul.f32 %v562_v38, %v546_v42 }
  0xac   :  { %v626_v47 = vpop.permute.xlu1 %625  ;;  %v624_v48 = vpop.permute.xlu0 %623  ;;  %v2571_v49 = vpack.c.bf16 %v580_v43, %v576_v44 }
  0xad   :  { %v629_v51 = vsel %vm627_vm1, %v622_v19, %v626_v47  ;;  %v628_v52 = vsel %vm627_vm1, %v620_v14, %v624_v48  ;;  %v634_v53 = vsel %vm627_vm1, %v624_v48, %v612_v26  ;;  %v635_v54 = vsel %vm627_vm1, %v626_v47, %v614_v25 }
  0xae   :  { %1012 = vmatprep.subr.bf16.mxu0 %v2571_v49  ;;  %v662_v55 = vmul.f32 %v654_v45, %v634_v53  ;;  %v666_v56 = vmul.f32 %v654_v45, %v635_v54  ;;  %v661_v57 = vmul.f32 %v650_v46, %v628_v52  ;;  %v665_v58 = vmul.f32 %v650_v46, %v629_v51 }
  0xaf   :  { %v566_v25 = vrot.slane %v553_v32, %v3003_v36  ;;  %v570_v26 = vrot.slane %v553_v32, %v3005_v37  ;;  %v482_v49 = vrot.slane %v469_v13, %v3003_v36  ;;  %v2563_v51 = vpack.c.bf16 %v2838_v3, %v2824_v1 }
  0xb0   :  { %v530_v59 = vpop.permute.xlu1 %529  ;;  %v528_v60 = vpop.permute.xlu0 %527  ;;  %v2577_v61 = vpack.c.bf16 %v666_v56, %v662_v55  ;;  %v2576_v62 = vpack.c.bf16 %v665_v58, %v661_v57  ;;  %v2562_v55 = vpack.c.bf16 %v2847_v4, %v2852_v5 }
  0xb1   :  { %v549_v63 = vsel %vm543_vm2, %v530_v59, %v534_v33  ;;  %v548_v8 = vsel %vm543_vm2, %v528_v60, %v532_v34 }
  0xb2   :  { %v579_v9 = vmul.f32 %v558_v50, %v549_v63  ;;  %v575_v12 = vmul.f32 %v558_v50, %v548_v8  ;;  %1053 = vmatprep.subr.bf16.mxu1 %v2577_v61  ;;  %v486_v50 = vrot.slane %v469_v13, %v3005_v37  ;;  %v2564_v13 = vpack.c.bf16 %v2833_v2, %v2819_v0 }
  0xb3   :  { %1054 = vmatpush1.bf16.msra.mxu1 %v2576_v62  ;;  %v357_v62 = vld [vmem:[#allocation3 + $0x3] ss:$8 sm:$0xf] }
  0xb4   :  { %v450_v14 = vpop.permute.xlu1 %449  ;;  %v448_v15 = vpop.permute.xlu0 %447  ;;  %v2570_v17 = vpack.c.bf16 %v579_v9, %v575_v12  ;;  %v2565_v9 = vpack.c.bf16 %v2869_v6, %v2874_v7  ;;  %v366_v12 = vrot.slane %v357_v62, %v2974_v11 }
  0xb6   :  { %1013 = vmatpush1.bf16.msra.mxu0 %v2570_v17 }
  0xb8   :  { %v454_v19 = vpop.permute.xlu1 %453  ;;  %v452_v20 = vpop.permute.xlu0 %451 }
  0xb9   :  { %v463_v21 = vsel %vm459_vm3, %v450_v14, %v454_v19  ;;  %v462_v22 = vsel %vm459_vm3, %v448_v15, %v452_v20 }
  0xba   :  { %v496_v23 = vmul.f32 %v478_v18, %v463_v21  ;;  %v492_v24 = vmul.f32 %v478_v18, %v462_v22 }
  0xbc   :  { %v542_v27 = vpop.permute.xlu1 %541  ;;  %v540_v28 = vpop.permute.xlu0 %539  ;;  %v2567_v29 = vpack.c.bf16 %v496_v23, %v492_v24 }
  0xbd   :  { %v545_v31 = vsel %vm543_vm2, %v538_v39, %v542_v27  ;;  %v551_v33 = vsel %vm543_vm2, %v542_v27, %v530_v59  ;;  %v544_v34 = vsel %vm543_vm2, %v536_v40, %v540_v28  ;;  %v550_v35 = vsel %vm543_vm2, %v540_v28, %v528_v60 }
  0xbe   :  { %v581_v38 = vmul.f32 %v566_v25, %v545_v31  ;;  %v582_v41 = vmul.f32 %v570_v26, %v551_v33  ;;  %v577_v32 = vmul.f32 %v566_v25, %v544_v34  ;;  %v578_v42 = vmul.f32 %v570_v26, %v550_v35  ;;  %1014 = vmatprep.subr.bf16.mxu0 %v2567_v29  ;;  %v273_v25 = vld [vmem:[#allocation3 + $0x2] ss:$8 sm:$0xf] }
  0xbf   :  { %v282_v29 = vrot.slane %v273_v25, %v2974_v11 }
  0xc0   :  { %v446_v43 = vpop.permute.xlu1 %445  ;;  %v444_v44 = vpop.permute.xlu0 %443  ;;  %v2573_v45 = vpack.c.bf16 %v582_v41, %v578_v42  ;;  %v2572_v46 = vpack.c.bf16 %v581_v38, %v577_v32  ;;  %v370_v41 = vrot.slane %v357_v62, %v3003_v36  ;;  %v374_v32 = vrot.slane %v357_v62, %v3005_v37 }
  0xc1   :  { %v465_v39 = vsel %vm459_vm3, %v446_v43, %v450_v14  ;;  %v464_v47 = vsel %vm459_vm3, %v444_v44, %v448_v15 }
  0xc2   :  { %v495_v48 = vmul.f32 %v474_v30, %v465_v39  ;;  %v491_v40 = vmul.f32 %v474_v30, %v464_v47  ;;  %1055 = vmatprep.subr.bf16.mxu1 %v2573_v45  ;;  %v278_v45 = vrot.slane %v273_v25, %v2983_v16 }
  0xc3   :  { %1056 = vmatpush1.bf16.msra.mxu1 %v2572_v46 }
  0xc4   :  { %v458_v52 = vpop.permute.xlu1 %457  ;;  %v456_v53 = vpop.permute.xlu0 %455  ;;  %v2566_v54 = vpack.c.bf16 %v495_v48, %v491_v40 }
  0xc5   :  { %v461_v56 = vsel %vm459_vm3, %v454_v19, %v458_v52  ;;  %v467_v57 = vsel %vm459_vm3, %v458_v52, %v446_v43  ;;  %v460_v58 = vsel %vm459_vm3, %v452_v20, %v456_v53  ;;  %v466_v59 = vsel %vm459_vm3, %v456_v53, %v444_v44 }
  0xc6   :  { %v497_v60 = vmul.f32 %v482_v49, %v461_v56  ;;  %v498_v1 = vmul.f32 %v486_v50, %v467_v57  ;;  %v493_v3 = vmul.f32 %v482_v49, %v460_v58  ;;  %v494_v61 = vmul.f32 %v486_v50, %v466_v59  ;;  %1015 = vmatpush1.bf16.msra.mxu0 %v2566_v54 }
  0xc7   :  { %1016 = vmatprep.subr.bf16.mxu0 %v2563_v51  ;;  %v362_v19 = vrot.slane %v357_v62, %v2983_v16 }
  0xc8   :  { %v334_v4 = vpop.permute.xlu1 %333  ;;  %v332_v5 = vpop.permute.xlu0 %331  ;;  %v2569_v63 = vpack.c.bf16 %v498_v1, %v494_v61  ;;  %v2568_v8 = vpack.c.bf16 %v497_v60, %v493_v3  ;;  %v189_v60 = vld [vmem:[#allocation3 + $0x1] ss:$8 sm:$0xf] }
  0xc9   :  { %v198_v62 = vrot.slane %v189_v60, %v2974_v11 }
  0xca   :  { %1057 = vmatprep.subr.bf16.mxu1 %v2569_v63  ;;  %1017 = vmatpush1.bf16.msra.mxu0 %v2562_v55 }
  0xcb   :  { %1058 = vmatpush1.bf16.msra.mxu1 %v2568_v8 }
  0xcc   :  { %v338_v14 = vpop.permute.xlu1 %337  ;;  %v336_v15 = vpop.permute.xlu0 %335  ;;  %1059 = vmatprep.subr.bf16.mxu1 %v2565_v9 }
  0xcd   :  { %v353_v17 = vsel %vm347_vm4, %v334_v4, %v338_v14  ;;  %v352_v18 = vsel %vm347_vm4, %v332_v5, %v336_v15 }
  0xce   :  { %v384_v6 = vmul.f32 %v366_v12, %v353_v17  ;;  %v380_v7 = vmul.f32 %v366_v12, %v352_v18 }
  0xcf   :  { %1060 = vmatpush1.bf16.msra.mxu1 %v2564_v13  ;;  %v286_v13 = vrot.slane %v273_v25, %v3003_v36 }
  0xd0   :  { %v346_v20 = vpop.permute.xlu1 %345  ;;  %v344_v21 = vpop.permute.xlu0 %343  ;;  %v2559_v22 = vpack.c.bf16 %v384_v6, %v380_v7  ;;  %v194_v6 = vrot.slane %v189_v60, %v2983_v16 }
  0xd1   :  { %v355_v0 = vsel %vm347_vm4, %v346_v20, %v334_v4  ;;  %v354_v2 = vsel %vm347_vm4, %v344_v21, %v332_v5 }
  0xd2   :  { %v383_v23 = vmul.f32 %v362_v19, %v355_v0  ;;  %v379_v24 = vmul.f32 %v362_v19, %v354_v2  ;;  %1018 = vmatprep.subr.bf16.mxu0 %v2559_v22 }
  0xd4   :  { %v250_v26 = vpop.permute.xlu1 %249  ;;  %v248_v27 = vpop.permute.xlu0 %247  ;;  %v2558_v28 = vpack.c.bf16 %v383_v23, %v379_v24 }
  0xd6   :  { %1019 = vmatpush1.bf16.msra.mxu0 %v2558_v28 }
  0xd8   :  { %v254_v30 = vpop.permute.xlu1 %253  ;;  %v252_v31 = vpop.permute.xlu0 %251 }
  0xd9   :  { %v269_v33 = vsel %vm263_vm5, %v250_v26, %v254_v30  ;;  %v268_v34 = vsel %vm263_vm5, %v248_v27, %v252_v31 }
  0xda   :  { %v300_v35 = vmul.f32 %v282_v29, %v269_v33  ;;  %v296_v38 = vmul.f32 %v282_v29, %v268_v34 }
  0xdc   :  { %v342_v42 = vpop.permute.xlu1 %341  ;;  %v340_v43 = vpop.permute.xlu0 %339  ;;  %v2555_v44 = vpack.c.bf16 %v300_v35, %v296_v38 }
  0xdd   :  { %v349_v46 = vsel %vm347_vm4, %v342_v42, %v346_v20  ;;  %v351_v39 = vsel %vm347_vm4, %v338_v14, %v342_v42  ;;  %v348_v47 = vsel %vm347_vm4, %v340_v43, %v344_v21  ;;  %v350_v48 = vsel %vm347_vm4, %v336_v15, %v340_v43 }
  0xde   :  { %v385_v40 = vmul.f32 %v370_v41, %v351_v39  ;;  %v386_v49 = vmul.f32 %v374_v32, %v349_v46  ;;  %v381_v50 = vmul.f32 %v370_v41, %v350_v48  ;;  %v382_v51 = vmul.f32 %v374_v32, %v348_v47  ;;  %1020 = vmatprep.subr.bf16.mxu0 %v2555_v44 }
  0xdf   :  { %v290_v14 = vrot.slane %v273_v25, %v3005_v37  ;;  %v202_v39 = vrot.slane %v189_v60, %v3003_v36  ;;  %v206_v47 = vrot.slane %v189_v60, %v3005_v37 }
  0xe0   :  { %v262_v52 = vpop.permute.xlu1 %261  ;;  %v260_v53 = vpop.permute.xlu0 %259  ;;  %v2561_v54 = vpack.c.bf16 %v386_v49, %v382_v51  ;;  %v2560_v55 = vpack.c.bf16 %v385_v40, %v381_v50 }
  0xe1   :  { %v271_v56 = vsel %vm263_vm5, %v262_v52, %v250_v26  ;;  %v270_v57 = vsel %vm263_vm5, %v260_v53, %v248_v27 }
  0xe2   :  { %v299_v58 = vmul.f32 %v278_v45, %v271_v56  ;;  %v295_v59 = vmul.f32 %v278_v45, %v270_v57  ;;  %1061 = vmatprep.subr.bf16.mxu1 %v2561_v54 }
  0xe3   :  { %1062 = vmatpush1.bf16.msra.mxu1 %v2560_v55 }
  0xe4   :  { %v166_v1 = vpop.permute.xlu1 %165  ;;  %v164_v3 = vpop.permute.xlu0 %163  ;;  %v2554_v61 = vpack.c.bf16 %v299_v58, %v295_v59 }
  0xe6   :  { %1021 = vmatpush1.bf16.msra.mxu0 %v2554_v61 }
  0xe8   :  { %v170_v4 = vpop.permute.xlu1 %169  ;;  %v168_v5 = vpop.permute.xlu0 %167 }
  0xe9   :  { %v185_v63 = vsel %vm179_vm6, %v166_v1, %v170_v4  ;;  %v184_v8 = vsel %vm179_vm6, %v164_v3, %v168_v5 }
  0xea   :  { %v216_v9 = vmul.f32 %v198_v62, %v185_v63  ;;  %v212_v12 = vmul.f32 %v198_v62, %v184_v8 }
  0xec   :  { %v258_v15 = vpop.permute.xlu1 %257  ;;  %v256_v17 = vpop.permute.xlu0 %255  ;;  %v2551_v18 = vpack.c.bf16 %v216_v9, %v212_v12 }
  0xed   :  { %v265_v7 = vsel %vm263_vm5, %v258_v15, %v262_v52  ;;  %v267_v19 = vsel %vm263_vm5, %v254_v30, %v258_v15  ;;  %v264_v20 = vsel %vm263_vm5, %v256_v17, %v260_v53  ;;  %v266_v21 = vsel %vm263_vm5, %v252_v31, %v256_v17  ;;  %v105_v31 = vld [vmem:[#allocation3] ss:$8 sm:$0xf] }
  0xee   :  { %v301_v22 = vmul.f32 %v286_v13, %v267_v19  ;;  %v302_v0 = vmul.f32 %v290_v14, %v265_v7  ;;  %v297_v2 = vmul.f32 %v286_v13, %v266_v21  ;;  %v298_v23 = vmul.f32 %v290_v14, %v264_v20  ;;  %1022 = vmatprep.subr.bf16.mxu0 %v2551_v18  ;;  %v721_v21 = vld [vmem:[#allocation3 + $0x7] ss:$8 sm:$0xf] }
  0xef   :  { %v114_v41 = vrot.slane %v105_v31, %v2974_v11  ;;  %v110_v50 = vrot.slane %v105_v31, %v2983_v16  ;;  %v122_v8 = vrot.slane %v105_v31, %v3005_v37 }
  0xf0   :  { %v178_v24 = vpop.permute.xlu1 %177  ;;  %v176_v25 = vpop.permute.xlu0 %175  ;;  %v2557_v26 = vpack.c.bf16 %v302_v0, %v298_v23  ;;  %v2556_v27 = vpack.c.bf16 %v301_v22, %v297_v2 }
  0xf1   :  { %v187_v28 = vsel %vm179_vm6, %v178_v24, %v166_v1  ;;  %v186_v29 = vsel %vm179_vm6, %v176_v25, %v164_v3 }
  0xf2   :  { %v215_v30 = vmul.f32 %v194_v6, %v187_v28  ;;  %v211_v33 = vmul.f32 %v194_v6, %v186_v29  ;;  %1063 = vmatprep.subr.bf16.mxu1 %v2557_v26 }
  0xf3   :  { %1064 = vmatpush1.bf16.msra.mxu1 %v2556_v27 }
  0xf4   :  { %v81_v34 = vpop.permute.xlu1 %80  ;;  %v79_v35 = vpop.permute.xlu0 %78  ;;  %v2550_v38 = vpack.c.bf16 %v215_v30, %v211_v33  ;;  %v726_v33 = vrot.slane %v721_v21, %v2983_v16 }
  0xf6   :  { %1023 = vmatpush1.bf16.msra.mxu0 %v2550_v38 }
  0xf8   :  { %v85_v32 = vpop.permute.xlu1 %84  ;;  %v83_v42 = vpop.permute.xlu0 %82 }
  0xf9   :  { %v102_v43 = vsel %vm96_vm7, %v81_v34, %v85_v32  ;;  %v101_v44 = vsel %vm96_vm7, %v79_v35, %v83_v42 }
  0xfa   :  { %v132_v45 = vmul.f32 %v114_v41, %v102_v43  ;;  %v128_v46 = vmul.f32 %v114_v41, %v101_v44  ;;  %v734_v43 = vrot.slane %v721_v21, %v3003_v36  ;;  %v738_v44 = vrot.slane %v721_v21, %v3005_v37 }
  0xfc   :  { %v174_v48 = vpop.permute.xlu1 %173  ;;  %v172_v40 = vpop.permute.xlu0 %171  ;;  %v2547_v49 = vpack.c.bf16 %v132_v45, %v128_v46 }
  0xfd   :  { %v181_v51 = vsel %vm179_vm6, %v174_v48, %v178_v24  ;;  %v183_v52 = vsel %vm179_vm6, %v170_v4, %v174_v48  ;;  %v180_v53 = vsel %vm179_vm6, %v172_v40, %v176_v25  ;;  %v182_v54 = vsel %vm179_vm6, %v168_v5, %v172_v40  ;;  %v2637_v40 = vld [vmem:[#allocation6] ss:$8 sps:$4 sm:$0xff]  }
  0xfe   :  { %v217_v55 = vmul.f32 %v202_v39, %v183_v52  ;;  %v218_v56 = vmul.f32 %v206_v47, %v181_v51  ;;  %v213_v57 = vmul.f32 %v202_v39, %v182_v54  ;;  %v214_v58 = vmul.f32 %v206_v47, %v180_v53  ;;  %1024 = vmatprep.subr.bf16.mxu0 %v2547_v49 }
  0xff   :  { %v118_v5 = vrot.slane %v105_v31, %v3003_v36  ;;  %v730_v24 = vrot.slane %v721_v21, %v2974_v11 }
 0x100   :  { %v93_v59 = vpop.permute.xlu1 %92  ;;  %v91_v60 = vpop.permute.xlu0 %90  ;;  %v2553_v1 = vpack.c.bf16 %v218_v56, %v214_v58  ;;  %v2552_v3 = vpack.c.bf16 %v217_v55, %v213_v57 }
 0x101   :  { %v104_v61 = vsel %vm96_vm7, %v93_v59, %v81_v34  ;;  %v103_v62 = vsel %vm96_vm7, %v91_v60, %v79_v35 }
 0x102   :  { %v131_v4 = vmul.f32 %v110_v50, %v104_v61  ;;  %v127_v63 = vmul.f32 %v110_v50, %v103_v62  ;;  %1065 = vmatprep.subr.bf16.mxu1 %v2553_v1 }
 0x103   :  { %1066 = vmatpush1.bf16.msra.mxu1 %v2552_v3 }
 0x104   :  { %v89_v9 = vpop.permute.xlu1 %88  ;;  %v87_v12 = vpop.permute.xlu0 %86  ;;  %v2546_v13 = vpack.c.bf16 %v131_v4, %v127_v63 }
 0x105   :  { %v98_v14 = vsel %vm96_vm7, %v89_v9, %v93_v59  ;;  %v100_v15 = vsel %vm96_vm7, %v85_v32, %v89_v9  ;;  %v97_v17 = vsel %vm96_vm7, %v87_v12, %v91_v60  ;;  %v99_v18 = vsel %vm96_vm7, %v83_v42, %v87_v12 }
 0x106   :  { %v133_v6 = vmul.f32 %v118_v5, %v100_v15  ;;  %v134_v7 = vmul.f32 %v122_v8, %v98_v14  ;;  %v129_v19 = vmul.f32 %v118_v5, %v99_v18  ;;  %v130_v20 = vmul.f32 %v122_v8, %v97_v17  ;;  %1025 = vmatpush1.bf16.msra.mxu0 %v2546_v13 }
 0x108   :  { %v702_v22 = vpop.permute.xlu1 %701  ;;  %v700_v0 = vpop.permute.xlu0 %699  ;;  %v2549_v2 = vpack.c.bf16 %v134_v7, %v130_v20  ;;  %v2548_v23 = vpack.c.bf16 %v133_v6, %v129_v19 }
 0x10a   :  { %1067 = vmatprep.subr.bf16.mxu1 %v2549_v2 }
 0x10b   :  { %1068 = vmatpush1.bf16.msra.mxu1 %v2548_v23 }
 0x10c   :  { %v706_v25 = vpop.permute.xlu1 %705  ;;  %v704_v26 = vpop.permute.xlu0 %703 }
 0x10d   :  { %v715_v27 = vsel %vm711_vm8, %v702_v22, %v706_v25  ;;  %v714_v28 = vsel %vm711_vm8, %v700_v0, %v704_v26 }
 0x10e   :  { %v748_v29 = vmul.f32 %v730_v24, %v715_v27  ;;  %v744_v30 = vmul.f32 %v730_v24, %v714_v28  ;;  %v2758_v24 = vmov 0  }
 0x10f   :  { %2635 = vset.pattern.permute.xlu1 %v2758_v24  ;;  %2636 = vset.pattern.permute.xlu0 %v2758_v24 }
 0x110   :  { %v698_v31 = vpop.permute.xlu1 %697  ;;  %v696_v34 = vpop.permute.xlu0 %695  ;;  %v2579_v35 = vpack.c.bf16 %v748_v29, %v744_v30 }
 0x111   :  { %v717_v38 = vsel %vm711_vm8, %v698_v31, %v702_v22  ;;  %v716_v41 = vsel %vm711_vm8, %v696_v34, %v700_v0 }
 0x112   :  { %v747_v32 = vmul.f32 %v726_v33, %v717_v38  ;;  %v743_v42 = vmul.f32 %v726_v33, %v716_v41  ;;  %1040 = vmatprep.subr.bf16.mxu0 %v2579_v35 }
 0x114   :  { %v710_v45 = vpop.permute.xlu1 %709  ;;  %v2578_v46 = vpack.c.bf16 %v747_v32, %v743_v42 }
 0x115   :  { %v713_v39 = vsel %vm711_vm8, %v706_v25, %v710_v45  ;;  %v719_v47 = vsel %vm711_vm8, %v710_v45, %v698_v31  ;;  %v708_v48 = vpop.permute.xlu0 %707  ;;  %v1134_v45 = vld [vmem:[%s3677_s4] sm:$0xff] }
 0x116   :  { %v749_v49 = vmul.f32 %v734_v43, %v713_v39  ;;  %v750_v50 = vmul.f32 %v738_v44, %v719_v47  ;;  %v712_v51 = vsel %vm711_vm8, %v704_v26, %v708_v48  ;;  %v718_v52 = vsel %vm711_vm8, %v708_v48, %v696_v34  ;;  %1041 = vmatpush2.bf16.msra.mxu0 %v2578_v46  ;;  %v1142_v47 = vld [vmem:[%s3678_s5] sm:$0xff]  ;;  %v1135_v48 = vld [vmem:[%s3677_s4 + $0x8] sm:$0xff] }
 0x117   :  { %v745_v53 = vmul.f32 %v734_v43, %v712_v51  ;;  %v746_v54 = vmul.f32 %v738_v44, %v718_v52  ;;  %v1143_v52 = vld [vmem:[%s3678_s5 + $0x8] sm:$0xff] }
 0x119   :  { %1043 = vmatmul.mubr.bf16.vlgmr.msra.gmra.mxu0 %v2637_v40  ;;  %v2581_v55 = vpack.c.bf16 %v750_v50, %v746_v54  ;;  %v2580_v56 = vpack.c.bf16 %v749_v49, %v745_v53 }
 0x11b   :  { %1083 = vmatprep.subr.bf16.mxu1 %v2581_v55 }
 0x11c   :  { %1084 = vmatpush2.bf16.msra.mxu1 %v2580_v56 }
 0x11f   :  { %1086 = vmatmul.mubr.bf16.vlgmr.msra.gmra.mxu1 %v2637_v40 }
 0x1d9   :  { %v3172_v57 = vpop.f32.mrf.mxu0 }
 0x1da   :  { %v1106_v58 = vmul.f32 %v3172_v57, %v3172_v57 }
 0x1db   :  { %v3176_v59 = vpop.f32.mrf.mxu0 }
 0x1dc   :  { %v1096_v60 = vadd.f32 %v3176_v59, %v3172_v57  ;;  %v1107_v1 = vmul.f32 %v3176_v59, %v3176_v59 }
 0x1dd   :  { %v3182_v3 = vpop.f32.mrf.mxu0 }
 0x1de   :  { %v1114_v61 = vadd.f32 %v1107_v1, %v1106_v58  ;;  %v1110_v62 = vmul.f32 %v3182_v3, %v3182_v3 }
 0x1df   :  { %v3186_v4 = vpop.f32.mrf.mxu1  ;;  %v3188_v63 = vpop.f32.mrf.mxu0 }
 0x1e0   :  { %v1108_v5 = vmul.f32 %v3186_v4, %v3186_v4  ;;  %v1101_v8 = vadd.f32 %v3188_v63, %v3182_v3  ;;  %v1111_v9 = vmul.f32 %v3188_v63, %v3188_v63  ;;  %v1097_v12 = vadd.f32 %v1096_v60, %v3186_v4 }
 0x1e1   :  { %v3197_v13 = vpop.f32.mrf.mxu1 }
 0x1e2   :  { %v1098_v14 = vadd.f32 %v1097_v12, %v3197_v13  ;;  %v1109_v15 = vmul.f32 %v3197_v13, %v3197_v13  ;;  %v1115_v17 = vadd.f32 %v1114_v61, %v1108_v5  ;;  %v1119_v18 = vadd.f32 %v1111_v9, %v1110_v62 }
 0x1e3   :  { %v3202_v6 = vpop.f32.mrf.mxu1 }
 0x1e4   :  { %v1112_v7 = vmul.f32 %v3202_v6, %v3202_v6  ;;  %1099 = vadd.xlane.f32.xlu0 %v1098_v14  ;;  %v1102_v19 = vadd.f32 %v1101_v8, %v3202_v6  ;;  %v1116_v21 = vadd.f32 %v1115_v17, %v1109_v15 }
 0x1e5   :  { %v3207_v20 = vpop.f32.mrf.mxu1 }
 0x1e6   :  { %v1103_v22 = vadd.f32 %v1102_v19, %v3207_v20  ;;  %v1113_v0 = vmul.f32 %v3207_v20, %v3207_v20  ;;  %v1120_v2 = vadd.f32 %v1119_v18, %v1112_v7 }
 0x1e8   :  { %1117 = vadd.xlane.f32.xlu0 %v1116_v21  ;;  %1104 = vadd.xlane.f32.xlu1 %v1103_v22  ;;  %v1121_v23 = vadd.f32 %v1120_v2, %v1113_v0 }
 0x1ec   :  { %1122 = vadd.xlane.f32.xlu0 %v1121_v23 }
 0x26d   :  { %v1100_v25 = vpop.xlane.xlu0 %1099 }
 0x26e   :  { %v1124_v26 = vmul.f32 0.001953125, %v1100_v25 }
 0x270   :  { %v1128_v29 = vmul.f32 %v1124_v26, %v1124_v26 }
 0x271   :  { %v1118_v27 = vpop.xlane.xlu0 %1117  ;;  %v1105_v28 = vpop.xlane.xlu1 %1104 }
 0x272   :  { %v1126_v30 = vmul.f32 0.001953125, %v1118_v27  ;;  %v1125_v33 = vmul.f32 0.001953125, %v1105_v28  ;;  %v2640_v28 = vld [vmem:[#allocation8 + $0x4] ss:$8 sps:$4 sm:$0xff]  }
 0x273   :  { %2472 = vmatprep.mubr.msk.bf16.mxu0 %vm1006_vm0, %v2640_v28  ;;  %2473 = vmatprep.mubr.msk.bf16.mxu1 %vm1006_vm0, %v2640_v28 }
 0x274   :  { %v1130_v31 = vsub.f32 %v1126_v30, %v1128_v29  ;;  %v1129_v38 = vmul.f32 %v1125_v33, %v1125_v33  ;;  %v1736_v29 = vld [vmem:[#allocation3 + $0x6] ss:$8 sm:$0xf] }
 0x275   :  { %v1123_v34 = vpop.xlane.xlu0 %1122 }
 0x276   :  { %v1132_v35 = vmax.f32 %v1130_v31, 0.0  ;;  %v1127_v41 = vmul.f32 0.001953125, %v1123_v34  ;;  %v1745_v31 = vrot.slane %v1736_v29, %v2974_v11 }
 0x278   :  { %v1136_v32 = vadd.f32 1e-05, %v1132_v35  ;;  %v1131_v42 = vsub.f32 %v1127_v41, %v1129_v38 }
 0x27a   :  { %2643 = vrsqrt.f32 %v1136_v32  ;;  %v1133_v43 = vmax.f32 %v1131_v42, 0.0  ;;  %v1741_v42 = vrot.slane %v1736_v29, %v2983_v16 }
 0x27c   :  { %v1137_v44 = vadd.f32 1e-05, %v1133_v43 }
 0x27e   :  { %2645 = vrsqrt.f32 %v1137_v44 }
 0x287   :  { %v2644_v46 = vpop.eup %2643 }
 0x288   :  { %v1140_v39 = vmul.f32 %v2644_v46, %v1134_v45 }
 0x28a   :  { %1150 = vperm.xlu1 %2635, %v1140_v39   ;;  %v1144_v40 = vmul.f32 %v1140_v39, %v1124_v26 }
 0x28b   :  { %v2646_v49 = vpop.eup %2645 }
 0x28c   :  { %v1146_v50 = vsub.f32 %v1142_v47, %v1144_v40  ;;  %v1141_v51 = vmul.f32 %v2646_v49, %v1135_v48  ;;  %v1654_v49 = vld [vmem:[#allocation3 + $0x5] ss:$8 sm:$0xf] }
 0x28e   :  { %1168 = vperm.xlu1 %2635, %v1146_v50   ;;  %1155 = vperm.xlu0 %2636, %v1141_v51   ;;  %v1145_v53 = vmul.f32 %v1141_v51, %v1125_v33 }
 0x290   :  { %v1147_v54 = vsub.f32 %v1143_v52, %v1145_v53  ;;  %v1663_v53 = vrot.slane %v1654_v49, %v2974_v11 }
 0x292   :  { %1173 = vperm.xlu1 %2635, %v1147_v54  }
 0x305   :  { %v1151_v55 = vpop.permute.xlu1 %1150 }
 0x306   :  { %v1159_v56 = vmul.f32 %v1151_v55, %v3176_v59  ;;  %v1160_v60 = vmul.f32 %v1151_v55, %v3186_v4  ;;  %v1158_v5 = vmul.f32 %v1151_v55, %v3172_v57  ;;  %v1161_v8 = vmul.f32 %v1151_v55, %v3197_v13 }
 0x309   :  { %v1169_v58 = vpop.permute.xlu1 %1168  ;;  %v1156_v9 = vpop.permute.xlu0 %1155 }
 0x30a   :  { %v1177_v1 = vadd.f32 %v1169_v58, %v1159_v56  ;;  %v1178_v61 = vadd.f32 %v1169_v58, %v1160_v60  ;;  %v1176_v12 = vadd.f32 %v1169_v58, %v1158_v5  ;;  %v1179_v59 = vadd.f32 %v1169_v58, %v1161_v8 }
 0x30b   :  { %v1163_v15 = vmul.f32 %v1156_v9, %v3188_v63  ;;  %v1164_v18 = vmul.f32 %v1156_v9, %v3202_v6  ;;  %v1162_v19 = vmul.f32 %v1156_v9, %v3182_v3  ;;  %v1165_v3 = vmul.f32 %v1156_v9, %v3207_v20 }
 0x30c   :  { %v3226_v62 = vmax.f32 %v1177_v1, 0.0  ;;  %v3234_v14 = vmax.f32 %v1178_v61, 0.0  ;;  %v3241_v57 = vmax.f32 %v1176_v12, 0.0  ;;  %v3243_v13 = vmax.f32 %v1179_v59, 0.0 }
 0x30d   :  { %v1174_v4 = vpop.permute.xlu1 %1173  ;;  %v1749_v1 = vrot.slane %v1736_v29, %v3003_v36  ;;  %v1753_v61 = vrot.slane %v1736_v29, %v3005_v37 }
 0x30e   :  { %1634 = vrot.lane.b32.xlu0 %v3226_v62, %s2751_s10  ;;  %1716 = vrot.lane.b32.xlu1 %v3226_v62, %s2750_s24  ;;  %v1181_v17 = vadd.f32 %v1174_v4, %v1163_v15  ;;  %v1182_v63 = vadd.f32 %v1174_v4, %v1164_v18  ;;  %v1180_v21 = vadd.f32 %v1174_v4, %v1162_v19 }
 0x30f   :  { %v1183_v0 = vadd.f32 %v1174_v4, %v1165_v3  ;;  %v1659_v15 = vrot.slane %v1654_v49, %v2983_v16 }
 0x310   :  { %v3250_v7 = vmax.f32 %v1181_v17, 0.0  ;;  %v3257_v22 = vmax.f32 %v1182_v63, 0.0  ;;  %v3263_v6 = vmax.f32 %v1180_v21, 0.0 }
 0x311   :  { %v3278_v2 = vmax.f32 %v1183_v0, 0.0 }
 0x312   :  { %1638 = vrot.lane.b32.xlu0 %v3234_v14, %s2751_s10  ;;  %1720 = vrot.lane.b32.xlu1 %v3234_v14, %s2750_s24 }
 0x316   :  { %1724 = vrot.lane.b32.xlu0 %v3243_v13, %s2750_s24  ;;  %1712 = vrot.lane.b32.xlu1 %v3241_v57, %s2750_s24 }
 0x31a   :  { %1630 = vrot.lane.b32.xlu0 %v3241_v57, %s2751_s10  ;;  %1718 = vrot.lane.b32.xlu1 %v3250_v7, %s2750_s24 }
 0x31e   :  { %1552 = vrot.lane.b32.xlu0 %v3226_v62, %s2752_s15  ;;  %1722 = vrot.lane.b32.xlu1 %v3257_v22, %s2750_s24 }
 0x322   :  { %1556 = vrot.lane.b32.xlu0 %v3234_v14, %s2752_s15  ;;  %1714 = vrot.lane.b32.xlu1 %v3263_v6, %s2750_s24 }
 0x326   :  { %1642 = vrot.lane.b32.xlu0 %v3243_v13, %s2751_s10  ;;  %1636 = vrot.lane.b32.xlu1 %v3250_v7, %s2751_s10 }
 0x32a   :  { %1548 = vrot.lane.b32.xlu0 %v3241_v57, %s2752_s15  ;;  %1640 = vrot.lane.b32.xlu1 %v3257_v22, %s2751_s10 }
 0x32e   :  { %1560 = vrot.lane.b32.xlu0 %v3243_v13, %s2752_s15  ;;  %1726 = vrot.lane.b32.xlu1 %v3278_v2, %s2750_s24 }
 0x332   :  { %1438 = vrot.lane.b32.xlu0 %v3241_v57, %s2753_s16  ;;  %1632 = vrot.lane.b32.xlu1 %v3263_v6, %s2751_s10 }
 0x336   :  { %1442 = vrot.lane.b32.xlu0 %v3226_v62, %s2753_s16  ;;  %1554 = vrot.lane.b32.xlu1 %v3250_v7, %s2752_s15 }
 0x33a   :  { %1450 = vrot.lane.b32.xlu0 %v3243_v13, %s2753_s16  ;;  %1558 = vrot.lane.b32.xlu1 %v3257_v22, %s2752_s15 }
 0x33e   :  { %1356 = vrot.lane.b32.xlu0 %v3241_v57, %s2754_s17  ;;  %1644 = vrot.lane.b32.xlu1 %v3278_v2, %s2751_s10 }
 0x342   :  { %1360 = vrot.lane.b32.xlu0 %v3226_v62, %s2754_s17  ;;  %1550 = vrot.lane.b32.xlu1 %v3263_v6, %s2752_s15 }
 0x346   :  { %1446 = vrot.lane.b32.xlu0 %v3234_v14, %s2753_s16  ;;  %1562 = vrot.lane.b32.xlu1 %v3278_v2, %s2752_s15 }
 0x34a   :  { %1368 = vrot.lane.b32.xlu0 %v3243_v13, %s2754_s17  ;;  %1440 = vrot.lane.b32.xlu1 %v3263_v6, %s2753_s16 }
 0x34e   :  { %1274 = vrot.lane.b32.xlu0 %v3241_v57, %s2755_s18  ;;  %1444 = vrot.lane.b32.xlu1 %v3250_v7, %s2753_s16 }
 0x352   :  { %1278 = vrot.lane.b32.xlu0 %v3226_v62, %s2755_s18  ;;  %1452 = vrot.lane.b32.xlu1 %v3278_v2, %s2753_s16 }
 0x356   :  { %1364 = vrot.lane.b32.xlu0 %v3234_v14, %s2754_s17  ;;  %1358 = vrot.lane.b32.xlu1 %v3263_v6, %s2754_s17 }
 0x35a   :  { %1286 = vrot.lane.b32.xlu0 %v3243_v13, %s2755_s18  ;;  %1362 = vrot.lane.b32.xlu1 %v3250_v7, %s2754_s17 }
 0x35e   :  { %1192 = vrot.lane.b32.xlu0 %v3241_v57, %s2756_s19  ;;  %1448 = vrot.lane.b32.xlu1 %v3257_v22, %s2753_s16  ;;  %s2759_s16 = smov [#allocation9]  }
 0x362   :  { %1196 = vrot.lane.b32.xlu0 %v3226_v62, %s2756_s19  ;;  %1370 = vrot.lane.b32.xlu1 %v3278_v2, %s2754_s17 }
 0x366   :  { %1282 = vrot.lane.b32.xlu0 %v3234_v14, %s2755_s18  ;;  %1276 = vrot.lane.b32.xlu1 %v3263_v6, %s2755_s18 }
 0x36a   :  { %1204 = vrot.lane.b32.xlu0 %v3243_v13, %s2756_s19  ;;  %1280 = vrot.lane.b32.xlu1 %v3250_v7, %s2755_s18 }
 0x36e   :  { %1200 = vrot.lane.b32.xlu0 %v3234_v14, %s2756_s19  ;;  %1366 = vrot.lane.b32.xlu1 %v3257_v22, %s2754_s17  ;;  %s2309_s17 = sshll.u32 %s2759_s16, 4  ;;  %s2310_s17 = int_to_ptr.vmem [resolvable:$true] %s2309_s17 }
 0x36f   :  { %s2719_s3 = scalar_lea.vmem %s2310_s17, 1024  ;;  %p2724_p2 = scmp.lt.s32.totalorder %s2310_s17, %s2310_s17 }
 0x370   :  { %p2720_p1 = scmp.ne.s32.totalorder %s2310_s17, %s2719_s3  ;;  %p2725_p3 = scmp.lt.s32.totalorder %s2719_s3, %s2719_s3 }
 0x372   :  { %1798 = vrot.lane.b32.xlu0 %v3226_v62, %s2757_s2  ;;  %1288 = vrot.lane.b32.xlu1 %v3278_v2, %s2755_s18  ;;  %p2726_p4 = por %p2725_p3, %p2724_p2 }
 0x374   :  { %p2727_p5 = pnand %p2726_p4, %p2720_p1 }
 0x376   :  { %1802 = vrot.lane.b32.xlu0 %v3234_v14, %s2757_s2  ;;  %1194 = vrot.lane.b32.xlu1 %v3263_v6, %s2756_s19 }
 0x37a   :  { %1794 = vrot.lane.b32.xlu0 %v3241_v57, %s2757_s2  ;;  %1198 = vrot.lane.b32.xlu1 %v3250_v7, %s2756_s19 }
 0x37e   :  { %1806 = vrot.lane.b32.xlu0 %v3243_v13, %s2757_s2  ;;  %1284 = vrot.lane.b32.xlu1 %v3257_v22, %s2755_s18 }
 0x380   :  { %v1635_v20 = vpop.permute.xlu0 %1634  ;;  %v1717_v23 = vpop.permute.xlu1 %1716 }
 0x382   :  { %1206 = vrot.lane.b32.xlu1 %v3278_v2, %s2756_s19 }
 0x384   :  { %v3366_v24 = vpop.permute.xlu0 %1638  ;;  %v1721_v25 = vpop.permute.xlu1 %1720 }
 0x385   :  { %v1730_v34 = vsel %vm627_vm1, %v1717_v23, %v1721_v25  ;;  %v1648_v54 = vsel %vm543_vm2, %v1635_v20, %v3366_v24 }
 0x386   :  { %1202 = vrot.lane.b32.xlu1 %v3257_v22, %s2756_s19  ;;  %v1759_v32 = vmul.f32 %v1745_v31, %v1730_v34  ;;  %v1677_v60 = vmul.f32 %v1663_v53, %v1648_v54 }
 0x388   :  { %v1725_v26 = vpop.permute.xlu0 %1724  ;;  %v1713_v27 = vpop.permute.xlu1 %1712 }
 0x389   :  { %v1732_v44 = vsel %vm627_vm1, %v1713_v27, %v1717_v23  ;;  %v1728_v8 = vsel %vm627_vm1, %v1721_v25, %v1725_v26  ;;  %v1734_v9 = vsel %vm627_vm1, %v1725_v26, %v1713_v27 }
 0x38a   :  { %1800 = vrot.lane.b32.xlu1 %v3250_v7, %s2757_s2  ;;  %v1758_v48 = vmul.f32 %v1741_v42, %v1732_v44  ;;  %v1760_v63 = vmul.f32 %v1749_v1, %v1728_v8  ;;  %v1761_v19 = vmul.f32 %v1753_v61, %v1734_v9 }
 0x38c   :  { %v3372_v30 = vpop.permute.xlu0 %1630  ;;  %v1719_v33 = vpop.permute.xlu1 %1718 }
 0x38d   :  { %v1650_v0 = vsel %vm543_vm2, %v3372_v30, %v1635_v20 }
 0x38e   :  { %1804 = vrot.lane.b32.xlu1 %v3257_v22, %s2757_s2  ;;  %v1676_v29 = vmul.f32 %v1659_v15, %v1650_v0 }
 0x390   :  { %v3381_v35 = vpop.permute.xlu0 %1552  ;;  %v1723_v38 = vpop.permute.xlu1 %1722 }
 0x391   :  { %v1731_v41 = vsel %vm627_vm1, %v1719_v33, %v1723_v38 }
 0x392   :  { %v1763_v43 = vmul.f32 %v1745_v31, %v1731_v41  ;;  %1796 = vrot.lane.b32.xlu1 %v3263_v6, %s2757_s2  ;;  %v1572_v31 = vld [vmem:[#allocation3 + $0x4] ss:$8 sm:$0xf] }
 0x394   :  { %v3390_v45 = vpop.permute.xlu0 %1556  ;;  %v1715_v46 = vpop.permute.xlu1 %1714  ;;  %v2611_v39 = vpack.c.bf16 %v1763_v43, %v1759_v32  ;;  %v1581_v32 = vrot.slane %v1572_v31, %v2974_v11 }
 0x395   :  { %v1733_v47 = vsel %vm627_vm1, %v1715_v46, %v1719_v33  ;;  %v1566_v20 = vsel %vm459_vm3, %v3381_v35, %v3390_v45 }
 0x396   :  { %v1762_v40 = vmul.f32 %v1741_v42, %v1733_v47  ;;  %1808 = vrot.lane.b32.xlu1 %v3278_v2, %s2757_s2  ;;  %2106 = vmatprep.subr.bf16.mxu0 %v2611_v39  ;;  %v1667_v39 = vrot.slane %v1654_v49, %v3003_v36  ;;  %v1671_v47 = vrot.slane %v1654_v49, %v3005_v37 }
 0x398   :  { %v2610_v50 = vpack.c.bf16 %v1762_v40, %v1758_v48  ;;  %v1643_v51 = vpop.permute.xlu0 %1642  ;;  %v1637_v52 = vpop.permute.xlu1 %1636 }
 0x399   :  { %v1646_v40 = vsel %vm543_vm2, %v3366_v24, %v1643_v51 }
 0x39a   :  { %2107 = vmatpush1.bf16.msra.mxu0 %v2610_v50  ;;  %v1652_v50 = vsel %vm543_vm2, %v1643_v51, %v3372_v30 }
 0x39c   :  { %v3400_v55 = vpop.permute.xlu0 %1548  ;;  %v1641_v56 = vpop.permute.xlu1 %1640 }
 0x39d   :  { %v1649_v58 = vsel %vm543_vm2, %v1637_v52, %v1641_v56  ;;  %v1568_v30 = vsel %vm459_vm3, %v3400_v55, %v3381_v35 }
 0x39e   :  { %v1681_v5 = vmul.f32 %v1663_v53, %v1649_v58  ;;  %v1577_v58 = vrot.slane %v1572_v31, %v2983_v16 }
 0x3a0   :  { %v1561_v12 = vpop.permute.xlu0 %1560  ;;  %v1727_v59 = vpop.permute.xlu1 %1726  ;;  %v2607_v4 = vpack.c.bf16 %v1681_v5, %v1677_v60 }
 0x3a1   :  { %v1729_v17 = vsel %vm627_vm1, %v1723_v38, %v1727_v59  ;;  %v1735_v18 = vsel %vm627_vm1, %v1727_v59, %v1715_v46  ;;  %v1595_v46 = vmul.f32 %v1581_v32, %v1566_v20  ;;  %v1570_v35 = vsel %vm459_vm3, %v1561_v12, %v3400_v55 }
 0x3a2   :  { %v1764_v21 = vmul.f32 %v1749_v1, %v1729_v17  ;;  %v1765_v3 = vmul.f32 %v1753_v61, %v1735_v18  ;;  %2108 = vmatprep.subr.bf16.mxu0 %v2607_v4  ;;  %v1678_v1 = vmul.f32 %v1667_v39, %v1646_v40  ;;  %v1679_v61 = vmul.f32 %v1671_v47, %v1652_v50 }
 0x3a3   :  { %v1594_v4 = vmul.f32 %v1577_v58, %v1568_v30  ;;  %v1589_v17 = vrot.slane %v1572_v31, %v3005_v37 }
 0x3a4   :  { %v2612_v23 = vpack.c.bf16 %v1764_v21, %v1760_v63  ;;  %v3418_v25 = vpop.permute.xlu0 %1438  ;;  %v1633_v26 = vpop.permute.xlu1 %1632  ;;  %v2613_v27 = vpack.c.bf16 %v1765_v3, %v1761_v19  ;;  %v1564_v63 = vsel %vm459_vm3, %v3390_v45, %v1561_v12 }
 0x3a5   :  { %v1651_v28 = vsel %vm543_vm2, %v1633_v26, %v1637_v52 }
 0x3a6   :  { %v1680_v33 = vmul.f32 %v1659_v15, %v1651_v28  ;;  %2149 = vmatprep.subr.bf16.mxu1 %v2613_v27  ;;  %v1585_v15 = vrot.slane %v1572_v31, %v3003_v36  ;;  %v1597_v28 = vmul.f32 %v1589_v17, %v1570_v35 }
 0x3a7   :  { %2150 = vmatpush1.bf16.msra.mxu1 %v2612_v23 }
 0x3a8   :  { %v2606_v34 = vpack.c.bf16 %v1680_v33, %v1676_v29  ;;  %v3422_v38 = vpop.permute.xlu0 %1442  ;;  %v1555_v41 = vpop.permute.xlu1 %1554  ;;  %v1596_v27 = vmul.f32 %v1585_v15, %v1564_v63  ;;  %v1462_v33 = vld [vmem:[#allocation3 + $0x3] ss:$8 sm:$0xf] }
 0x3aa   :  { %2109 = vmatpush1.bf16.msra.mxu0 %v2606_v34  ;;  %v2598_v34 = vpack.c.bf16 %v3263_v6, %v3241_v57  ;;  %v2600_v6 = vpack.c.bf16 %v3257_v22, %v3234_v14  ;;  %v1380_v14 = vld [vmem:[#allocation3 + $0x2] ss:$8 sm:$0xf] }
 0x3ac   :  { %v3429_v42 = vpop.permute.xlu0 %1450  ;;  %v1559_v43 = vpop.permute.xlu1 %1558 }
 0x3ad   :  { %v1567_v44 = vsel %vm459_vm3, %v1555_v41, %v1559_v43 }
 0x3ae   :  { %v1599_v48 = vmul.f32 %v1581_v32, %v1567_v44  ;;  %v1471_v32 = vrot.slane %v1462_v33, %v2974_v11 }
 0x3b0   :  { %v3441_v52 = vpop.permute.xlu0 %1356  ;;  %v1645_v53 = vpop.permute.xlu1 %1644  ;;  %v2603_v54 = vpack.c.bf16 %v1599_v48, %v1595_v46  ;;  %v1467_v46 = vrot.slane %v1462_v33, %v2983_v16 }
 0x3b1   :  { %v1647_v60 = vsel %vm543_vm2, %v1641_v56, %v1645_v53  ;;  %v1653_v49 = vsel %vm543_vm2, %v1645_v53, %v1633_v26  ;;  %v2599_v26 = vpack.c.bf16 %v3250_v7, %v3226_v62  ;;  %v2601_v62 = vpack.c.bf16 %v3278_v2, %v3243_v13 }
 0x3b2   :  { %v1682_v5 = vmul.f32 %v1667_v39, %v1647_v60  ;;  %v1683_v24 = vmul.f32 %v1671_v47, %v1653_v49  ;;  %2110 = vmatprep.subr.bf16.mxu0 %v2603_v54  ;;  %v1458_v7 = vsel %vm347_vm4, %v3418_v25, %v3422_v38  ;;  %v1460_v2 = vsel %vm347_vm4, %v3429_v42, %v3418_v25 }
 0x3b3   :  { %v1485_v44 = vmul.f32 %v1471_v32, %v1458_v7  ;;  %v1484_v50 = vmul.f32 %v1467_v46, %v1460_v2  ;;  %v1389_v60 = vrot.slane %v1380_v14, %v2974_v11  ;;  %v1397_v7 = vrot.slane %v1380_v14, %v3005_v37 }
 0x3b4   :  { %v2608_v51 = vpack.c.bf16 %v1682_v5, %v1678_v1  ;;  %v3452_v8 = vpop.permute.xlu0 %1360  ;;  %v1551_v9 = vpop.permute.xlu1 %1550  ;;  %v2609_v59 = vpack.c.bf16 %v1683_v24, %v1679_v61  ;;  %v1475_v5 = vrot.slane %v1462_v33, %v3003_v36  ;;  %v1479_v24 = vrot.slane %v1462_v33, %v3005_v37 }
 0x3b5   :  { %v1569_v56 = vsel %vm459_vm3, %v1551_v9, %v1555_v41  ;;  %v1376_v25 = vsel %vm263_vm5, %v3441_v52, %v3452_v8 }
 0x3b6   :  { %v1598_v18 = vmul.f32 %v1577_v58, %v1569_v56  ;;  %2151 = vmatprep.subr.bf16.mxu1 %v2609_v59  ;;  %v1403_v61 = vmul.f32 %v1389_v60, %v1376_v25 }
 0x3b7   :  { %2152 = vmatpush1.bf16.msra.mxu1 %v2608_v51 }
 0x3b8   :  { %v2602_v19 = vpack.c.bf16 %v1598_v18, %v1594_v4  ;;  %v1447_v21 = vpop.permute.xlu0 %1446  ;;  %v1563_v3 = vpop.permute.xlu1 %1562 }
 0x3b9   :  { %v1565_v0 = vsel %vm459_vm3, %v1559_v43, %v1563_v3  ;;  %v1571_v23 = vsel %vm459_vm3, %v1563_v3, %v1551_v9  ;;  %v1454_v9 = vsel %vm347_vm4, %v1447_v21, %v3429_v42  ;;  %v1456_v59 = vsel %vm347_vm4, %v3422_v38, %v1447_v21 }
 0x3ba   :  { %v1600_v45 = vmul.f32 %v1585_v15, %v1565_v0  ;;  %v1601_v29 = vmul.f32 %v1589_v17, %v1571_v23  ;;  %2111 = vmatpush1.bf16.msra.mxu0 %v2602_v19  ;;  %v1385_v15 = vrot.slane %v1380_v14, %v2983_v16  ;;  %v1486_v63 = vmul.f32 %v1475_v5, %v1456_v59 }
 0x3bb   :  { %2112 = vmatprep.subr.bf16.mxu0 %v2599_v26  ;;  %v1487_v35 = vmul.f32 %v1479_v24, %v1454_v9 }
 0x3bc   :  { %v2604_v55 = vpack.c.bf16 %v1600_v45, %v1596_v27  ;;  %v3470_v12 = vpop.permute.xlu0 %1368  ;;  %v1441_v31 = vpop.permute.xlu1 %1440  ;;  %v2605_v41 = vpack.c.bf16 %v1601_v29, %v1597_v28  ;;  %v1298_v45 = vld [vmem:[#allocation3 + $0x1] ss:$8 sm:$0xf] }
 0x3bd   :  { %v1378_v38 = vsel %vm263_vm5, %v3470_v12, %v3441_v52  ;;  %v1303_v2 = vrot.slane %v1298_v45, %v2983_v16 }
 0x3be   :  { %2113 = vmatpush1.bf16.msra.mxu0 %v2598_v34  ;;  %2153 = vmatprep.subr.bf16.mxu1 %v2605_v41  ;;  %v1402_v27 = vmul.f32 %v1385_v15, %v1378_v38 }
 0x3bf   :  { %2154 = vmatpush1.bf16.msra.mxu1 %v2604_v55  ;;  %v1307_v55 = vrot.slane %v1298_v45, %v2974_v11 }
 0x3c0   :  { %v3481_v20 = vpop.permute.xlu0 %1274  ;;  %2155 = vmatprep.subr.bf16.mxu1 %v2601_v62  ;;  %v1445_v43 = vpop.permute.xlu1 %1444  ;;  %v1393_v62 = vrot.slane %v1380_v14, %v3003_v36 }
 0x3c1   :  { %v1459_v57 = vsel %vm347_vm4, %v1441_v31, %v1445_v43 }
 0x3c2   :  { %v1489_v13 = vmul.f32 %v1471_v32, %v1459_v57 }
 0x3c3   :  { %2156 = vmatpush1.bf16.msra.mxu1 %v2600_v6 }
 0x3c4   :  { %v3492_v39 = vpop.permute.xlu0 %1278  ;;  %v1453_v47 = vpop.permute.xlu1 %1452  ;;  %v2595_v48 = vpack.c.bf16 %v1489_v13, %v1485_v44 }
 0x3c5   :  { %v1461_v40 = vsel %vm347_vm4, %v1453_v47, %v1441_v31  ;;  %v1294_v52 = vsel %vm179_vm6, %v3481_v20, %v3492_v39 }
 0x3c6   :  { %v1488_v53 = vmul.f32 %v1467_v46, %v1461_v40  ;;  %2114 = vmatprep.subr.bf16.mxu0 %v2595_v48  ;;  %v1321_v32 = vmul.f32 %v1307_v55, %v1294_v52 }
 0x3c8   :  { %v2594_v22 = vpack.c.bf16 %v1488_v53, %v1484_v50  ;;  %v1365_v54 = vpop.permute.xlu0 %1364  ;;  %v1359_v58 = vpop.permute.xlu1 %1358 }
 0x3c9   :  { %v1372_v57 = vsel %vm263_vm5, %v1365_v54, %v3470_v12  ;;  %v1374_v6 = vsel %vm263_vm5, %v3452_v8, %v1365_v54 }
 0x3ca   :  { %2115 = vmatpush1.bf16.msra.mxu0 %v2594_v22  ;;  %v1404_v40 = vmul.f32 %v1393_v62, %v1374_v6  ;;  %v1405_v50 = vmul.f32 %v1397_v7, %v1372_v57 }
 0x3cc   :  { %v1363_v49 = vpop.permute.xlu1 %1362  ;;  %v3505_v30 = vpop.permute.xlu0 %1286 }
 0x3cd   :  { %v1377_v1 = vsel %vm263_vm5, %v1359_v58, %v1363_v49  ;;  %v1296_v8 = vsel %vm179_vm6, %v3505_v30, %v3481_v20 }
 0x3ce   :  { %v1407_v51 = vmul.f32 %v1389_v60, %v1377_v1  ;;  %v1320_v60 = vmul.f32 %v1303_v2, %v1296_v8 }
 0x3d0   :  { %v1449_v56 = vpop.permute.xlu1 %1448  ;;  %v2591_v4 = vpack.c.bf16 %v1407_v51, %v1403_v61  ;;  %v3522_v42 = vpop.permute.xlu0 %1192 }
 0x3d1   :  { %v1455_v17 = vsel %vm347_vm4, %v1449_v56, %v1453_v47  ;;  %v1457_v18 = vsel %vm347_vm4, %v1445_v43, %v1449_v56 }
 0x3d2   :  { %v1490_v19 = vmul.f32 %v1475_v5, %v1457_v18  ;;  %v1491_v3 = vmul.f32 %v1479_v24, %v1455_v17  ;;  %2116 = vmatprep.subr.bf16.mxu0 %v2591_v4  ;;  %v1311_v4 = vrot.slane %v1298_v45, %v3003_v36 }
 0x3d4   :  { %v2596_v21 = vpack.c.bf16 %v1490_v19, %v1486_v63  ;;  %v1371_v0 = vpop.permute.xlu1 %1370  ;;  %v2597_v23 = vpack.c.bf16 %v1491_v3, %v1487_v35  ;;  %v3527_v31 = vpop.permute.xlu0 %1196 }
 0x3d5   :  { %v1379_v26 = vsel %vm263_vm5, %v1371_v0, %v1359_v58  ;;  %v1212_v20 = vsel %vm96_vm7, %v3522_v42, %v3527_v31 }
 0x3d6   :  { %v1406_v28 = vmul.f32 %v1385_v15, %v1379_v26  ;;  %2157 = vmatprep.subr.bf16.mxu1 %v2597_v23  ;;  %v1315_v15 = vrot.slane %v1298_v45, %v3005_v37 }
 0x3d7   :  { %2158 = vmatpush1.bf16.msra.mxu1 %v2596_v21 }
 0x3d8   :  { %v2590_v29 = vpack.c.bf16 %v1406_v28, %v1402_v27  ;;  %v1277_v33 = vpop.permute.xlu1 %1276  ;;  %v1283_v44 = vpop.permute.xlu0 %1282 }
 0x3d9   :  { %v1290_v18 = vsel %vm179_vm6, %v1283_v44, %v3505_v30  ;;  %v1292_v63 = vsel %vm179_vm6, %v3492_v39, %v1283_v44 }
 0x3da   :  { %2117 = vmatpush1.bf16.msra.mxu0 %v2590_v29  ;;  %v1323_v23 = vmul.f32 %v1315_v15, %v1290_v18 }
 0x3dc   :  { %v1281_v34 = vpop.permute.xlu1 %1280  ;;  %v1205_v25 = vpop.permute.xlu0 %1204 }
 0x3dd   :  { %v1295_v41 = vsel %vm179_vm6, %v1277_v33, %v1281_v34  ;;  %v1214_v39 = vsel %vm96_vm7, %v1205_v25, %v3522_v42 }
 0x3de   :  { %v1325_v43 = vmul.f32 %v1307_v55, %v1295_v41 }
 0x3e0   :  { %v1367_v46 = vpop.permute.xlu1 %1366  ;;  %v2587_v13 = vpack.c.bf16 %v1325_v43, %v1321_v32  ;;  %v1201_v51 = vpop.permute.xlu0 %1200 }
 0x3e1   :  { %v1373_v47 = vsel %vm263_vm5, %v1367_v46, %v1371_v0  ;;  %v1375_v48 = vsel %vm263_vm5, %v1363_v49, %v1367_v46  ;;  %v1216_v49 = vld [vmem:[#allocation3] ss:$8 sm:$0xf]  ;;  %v1322_v0 = vmul.f32 %v1311_v4, %v1292_v63  ;;  %v1208_v32 = vsel %vm96_vm7, %v1201_v51, %v1205_v25 }
 0x3e2   :  { %v1408_v53 = vmul.f32 %v1393_v62, %v1375_v48  ;;  %v1409_v14 = vmul.f32 %v1397_v7, %v1373_v47  ;;  %2118 = vmatprep.subr.bf16.mxu0 %v2587_v13  ;;  %v1225_v24 = vrot.slane %v1216_v49, %v2974_v11  ;;  %v1221_v3 = vrot.slane %v1216_v49, %v2983_v16  ;;  %v1818_v47 = vld [vmem:[#allocation3 + $0x7] ss:$8 sm:$0xf] }
 0x3e3   :  { %v1229_v52 = vrot.slane %v1216_v49, %v3003_v36  ;;  %v1210_v42 = vsel %vm96_vm7, %v3527_v31, %v1201_v51  ;;  %v1827_v31 = vrot.slane %v1818_v47, %v2974_v11 }
 0x3e4   :  { %v2592_v12 = vpack.c.bf16 %v1408_v53, %v1404_v40  ;;  %v1289_v22 = vpop.permute.xlu1 %1288  ;;  %v2593_v54 = vpack.c.bf16 %v1409_v14, %v1405_v50  ;;  %v1239_v56 = vmul.f32 %v1225_v24, %v1212_v20  ;;  %v1799_v26 = vpop.permute.xlu0 %1798  ;;  %v1238_v55 = vmul.f32 %v1221_v3, %v1214_v39 }
 0x3e5   :  { %v1297_v58 = vsel %vm179_vm6, %v1289_v22, %v1277_v33  ;;  %v1240_v44 = vmul.f32 %v1229_v52, %v1210_v42 }
 0x3e6   :  { %v1324_v1 = vmul.f32 %v1303_v2, %v1297_v58  ;;  %2159 = vmatprep.subr.bf16.mxu1 %v2593_v54  ;;  %v1823_v54 = vrot.slane %v1818_v47, %v2983_v16 }
 0x3e7   :  { %2160 = vmatpush1.bf16.msra.mxu1 %v2592_v12 }
 0x3e8   :  { %v2586_v61 = vpack.c.bf16 %v1324_v1, %v1320_v60  ;;  %v1195_v5 = vpop.permute.xlu1 %1194  ;;  %v1803_v62 = vpop.permute.xlu0 %1802 }
 0x3e9   :  { %v1812_v14 = vsel %vm711_vm8, %v1799_v26, %v1803_v62 }
 0x3ea   :  { %2119 = vmatpush1.bf16.msra.mxu0 %v2586_v61 }
 0x3ec   :  { %v1199_v9 = vpop.permute.xlu1 %1198  ;;  %v1795_v53 = vpop.permute.xlu0 %1794 }
 0x3ed   :  { %v1213_v59 = vsel %vm96_vm7, %v1195_v5, %v1199_v9  ;;  %v1814_v60 = vsel %vm711_vm8, %v1795_v53, %v1799_v26 }
 0x3ee   :  { %v1243_v17 = vmul.f32 %v1225_v24, %v1213_v59  ;;  %v1840_v61 = vmul.f32 %v1823_v54, %v1814_v60  ;;  %v1835_v24 = vrot.slane %v1818_v47, %v3005_v37 }
 0x3f0   :  { %v1285_v35 = vpop.permute.xlu1 %1284  ;;  %v2583_v19 = vpack.c.bf16 %v1243_v17, %v1239_v56  ;;  %v1807_v25 = vpop.permute.xlu0 %1806 }
 0x3f1   :  { %v1291_v38 = vsel %vm179_vm6, %v1285_v35, %v1289_v22  ;;  %v1293_v21 = vsel %vm179_vm6, %v1281_v34, %v1285_v35  ;;  %v1233_v34 = vrot.slane %v1216_v49, %v3005_v37  ;;  %v1841_v22 = vmul.f32 %v1827_v31, %v1812_v14 }
 0x3f2   :  { %v1326_v27 = vmul.f32 %v1311_v4, %v1293_v21  ;;  %v1327_v28 = vmul.f32 %v1315_v15, %v1291_v38  ;;  %2120 = vmatprep.subr.bf16.mxu0 %v2583_v19  ;;  %v1810_v16 = vsel %vm711_vm8, %v1803_v62, %v1807_v25  ;;  %v1816_v51 = vsel %vm711_vm8, %v1807_v25, %v1795_v53  ;;  %v2642_v15 = vld [vmem:[#allocation8] ss:$8 sps:$4 sm:$0xff]  }
 0x3f3   :  { %v1241_v46 = vmul.f32 %v1233_v34, %v1208_v32  ;;  %v1843_v17 = vmul.f32 %v1835_v24, %v1816_v51 }
 0x3f4   :  { %v2588_v30 = vpack.c.bf16 %v1326_v27, %v1322_v0  ;;  %v1207_v45 = vpop.permute.xlu1 %1206  ;;  %v2589_v29 = vpack.c.bf16 %v1327_v28, %v1323_v23 }
 0x3f5   :  { %v1215_v33 = vsel %vm96_vm7, %v1207_v45, %v1195_v5  ;;  %v1831_v5 = vrot.slane %v1818_v47, %v3003_v36 }
 0x3f6   :  { %v1242_v41 = vmul.f32 %v1221_v3, %v1215_v33  ;;  %2161 = vmatprep.subr.bf16.mxu1 %v2589_v29 }
 0x3f7   :  { %2162 = vmatpush1.bf16.msra.mxu1 %v2588_v30  ;;  %v1842_v36 = vmul.f32 %v1831_v5, %v1810_v16 }
 0x3f8   :  { %v2582_v7 = vpack.c.bf16 %v1242_v41, %v1238_v55  ;;  %v1203_v43 = vpop.permute.xlu1 %1202 }
 0x3f9   :  { %v1209_v57 = vsel %vm96_vm7, %v1203_v43, %v1207_v45  ;;  %v1211_v6 = vsel %vm96_vm7, %v1199_v9, %v1203_v43 }
 0x3fa   :  { %v1244_v13 = vmul.f32 %v1229_v52, %v1211_v6  ;;  %v1245_v2 = vmul.f32 %v1233_v34, %v1209_v57  ;;  %2121 = vmatpush1.bf16.msra.mxu0 %v2582_v7 }
 0x3fc   :  { %v2584_v48 = vpack.c.bf16 %v1244_v13, %v1240_v44  ;;  %v1801_v40 = vpop.permute.xlu1 %1800  ;;  %v2585_v50 = vpack.c.bf16 %v1245_v2, %v1241_v46 }
 0x3fe   :  { %2163 = vmatprep.subr.bf16.mxu1 %v2585_v50 }
 0x3ff   :  { %2164 = vmatpush1.bf16.msra.mxu1 %v2584_v48 }
 0x400   :  { %v1805_v8 = vpop.permute.xlu1 %1804 }
 0x401   :  { %v1813_v12 = vsel %vm711_vm8, %v1801_v40, %v1805_v8 }
 0x402   :  { %v1845_v58 = vmul.f32 %v1827_v31, %v1813_v12 }
 0x404   :  { %v1797_v1 = vpop.permute.xlu1 %1796  ;;  %v2615_v11 = vpack.c.bf16 %v1845_v58, %v1841_v22 }
 0x405   :  { %v1815_v49 = vsel %vm711_vm8, %v1797_v1, %v1801_v40 }
 0x406   :  { %v1844_v20 = vmul.f32 %v1823_v54, %v1815_v49  ;;  %2136 = vmatprep.subr.bf16.mxu0 %v2615_v11 }
 0x408   :  { %v2614_v9 = vpack.c.bf16 %v1844_v20, %v1840_v61  ;;  %v1809_v59 = vpop.permute.xlu1 %1808  ;;  %v2238_v61 = vld [vmem:[%s3680_s7] sm:$0xff] }
 0x409   :  { %v1811_v56 = vsel %vm711_vm8, %v1805_v8, %v1809_v59  ;;  %v1817_v4 = vsel %vm711_vm8, %v1809_v59, %v1797_v1  ;;  %v2230_v1 = vld [vmem:[%s3679_s6] sm:$0xff] }
 0x40a   :  { %v1846_v37 = vmul.f32 %v1831_v5, %v1811_v56  ;;  %v1847_v18 = vmul.f32 %v1835_v24, %v1817_v4  ;;  %2137 = vmatpush2.bf16.msra.mxu0 %v2614_v9  ;;  %v2231_v5 = vld [vmem:[%s3679_s6 + $0x8] sm:$0xff] }
 0x40b   :  { %v2239_v9 = vld [vmem:[%s3680_s7 + $0x8] sm:$0xff] }
 0x40c   :  { %v2616_v63 = vpack.c.bf16 %v1846_v37, %v1842_v36  ;;  %v2617_v35 = vpack.c.bf16 %v1847_v18, %v1843_v17 }
 0x40d   :  { %2139 = vmatmul.mubr.bf16.vlgmr.msra.gmra.mxu0 %v2642_v15 }
 0x40e   :  { %2179 = vmatprep.subr.bf16.mxu1 %v2617_v35 }
 0x40f   :  { %2180 = vmatpush2.bf16.msra.mxu1 %v2616_v63 }
 0x412   :  { %2182 = vmatmul.mubr.bf16.vlgmr.msra.gmra.mxu1 %v2642_v15 }
 0x4cd   :  { %v3610_v19 = vpop.f32.mrf.mxu0 }
 0x4ce   :  { %v2202_v3 = vmul.f32 %v3610_v19, %v3610_v19 }
 0x4cf   :  { %v3614_v38 = vpop.f32.mrf.mxu0 }
 0x4d0   :  { %v2192_v10 = vadd.f32 %v3614_v38, %v3610_v19  ;;  %v2203_v21 = vmul.f32 %v3614_v38, %v3614_v38 }
 0x4d1   :  { %v3620_v0 = vpop.f32.mrf.mxu0 }
 0x4d2   :  { %v2210_v23 = vadd.f32 %v2203_v21, %v2202_v3  ;;  %v2183_v26 = vpop.f32.mrf.mxu1  ;;  %v2206_v30 = vmul.f32 %v3620_v0, %v3620_v0 }
 0x4d3   :  { %v2193_v27 = vadd.f32 %v2192_v10, %v2183_v26  ;;  %v2204_v28 = vmul.f32 %v2183_v26, %v2183_v26  ;;  %v3622_v39 = vpop.f32.mrf.mxu0 }
 0x4d4   :  { %v2197_v45 = vadd.f32 %v3622_v39, %v3620_v0  ;;  %v2207_v29 = vmul.f32 %v3622_v39, %v3622_v39  ;;  %v2185_v33 = vpop.f32.mrf.mxu1 }
 0x4d5   :  { %v2211_v55 = vadd.f32 %v2210_v23, %v2204_v28  ;;  %v2194_v52 = vadd.f32 %v2193_v27, %v2185_v33  ;;  %v2205_v34 = vmul.f32 %v2185_v33, %v2185_v33 }
 0x4d6   :  { %v2215_v41 = vadd.f32 %v2207_v29, %v2206_v30  ;;  %v2187_v32 = vpop.f32.mrf.mxu1  ;;  %v2653_v29 = vld [vmem:[%s3674_s1 + $0x10] sm:$0xff] }
 0x4d7   :  { %v2198_v42 = vadd.f32 %v2197_v45, %v2187_v32  ;;  %v2208_v62 = vmul.f32 %v2187_v32, %v2187_v32  ;;  %2195 = vadd.xlane.f32.xlu0 %v2194_v52  ;;  %v2212_v44 = vadd.f32 %v2211_v55, %v2205_v34 }
 0x4d8   :  { %v2189_v7 = vpop.f32.mrf.mxu1 }
 0x4d9   :  { %v2216_v43 = vadd.f32 %v2215_v41, %v2208_v62  ;;  %v2199_v57 = vadd.f32 %v2198_v42, %v2189_v7  ;;  %v2209_v6 = vmul.f32 %v2189_v7, %v2189_v7 }
 0x4db   :  { %2213 = vadd.xlane.f32.xlu0 %v2212_v44  ;;  %2200 = vadd.xlane.f32.xlu1 %v2199_v57  ;;  %v2217_v46 = vadd.f32 %v2216_v43, %v2209_v6  ;;  %v2655_v57 = vld [vmem:[%s3674_s1 + $0x20] sm:$0xff]  ;;  %v2656_v44 = vld [vmem:[%s3674_s1 + $0x28] sm:$0xff] }
 0x4df   :  { %2218 = vadd.xlane.f32.xlu0 %v2217_v46 }
 0x560   :  { %v2196_v13 = vpop.xlane.xlu0 %2195 }
 0x561   :  { %v2220_v2 = vmul.f32 0.001953125, %v2196_v13  ;;  %v2657_v13 = vld [vmem:[%s3674_s1 + $0x30] sm:$0xff] }
 0x563   :  { %v2224_v40 = vmul.f32 %v2220_v2, %v2220_v2 }
 0x564   :  { %v2214_v47 = vpop.xlane.xlu0 %2213  ;;  %v2201_v48 = vpop.xlane.xlu1 %2200 }
 0x565   :  { %v2222_v50 = vmul.f32 0.001953125, %v2214_v47  ;;  %v2221_v31 = vmul.f32 0.001953125, %v2201_v48  ;;  %v2658_v47 = vld [vmem:[%s3674_s1 + $0x38] sm:$0xff] }
 0x567   :  { %v2226_v53 = vsub.f32 %v2222_v50, %v2224_v40  ;;  %v2225_v12 = vmul.f32 %v2221_v31, %v2221_v31 }
 0x568   :  { %v2219_v14 = vpop.xlane.xlu0 %2218 }
 0x569   :  { %v2228_v8 = vmax.f32 %v2226_v53, 0.0  ;;  %v2223_v22 = vmul.f32 0.001953125, %v2219_v14 }
 0x56b   :  { %v2232_v54 = vadd.f32 1e-05, %v2228_v8  ;;  %v2227_v58 = vsub.f32 %v2223_v22, %v2225_v12 }
 0x56d   :  { %2647 = vrsqrt.f32 %v2232_v54  ;;  %v2229_v60 = vmax.f32 %v2227_v58, 0.0 }
 0x56f   :  { %v2233_v25 = vadd.f32 1e-05, %v2229_v60 }
 0x571   :  { %2649 = vrsqrt.f32 %v2233_v25 }
 0x57a   :  { %v2648_v11 = vpop.eup %2647 }
 0x57b   :  { %v2236_v49 = vmul.f32 %v2648_v11, %v2230_v1 }
 0x57d   :  { %2246 = vperm.xlu1 %2635, %v2236_v49   ;;  %v2240_v24 = vmul.f32 %v2236_v49, %v2220_v2 }
 0x57e   :  { %v2650_v20 = vpop.eup %2649 }
 0x57f   :  { %v2242_v16 = vsub.f32 %v2238_v61, %v2240_v24  ;;  %v2237_v51 = vmul.f32 %v2650_v20, %v2231_v5 }
 0x581   :  { %2264 = vperm.xlu1 %2635, %v2242_v16   ;;  %2251 = vperm.xlu0 %2636, %v2237_v51   ;;  %v2241_v59 = vmul.f32 %v2237_v51, %v2221_v31 }
 0x583   :  { %v2243_v56 = vsub.f32 %v2239_v9, %v2241_v59 }
 0x585   :  { %2269 = vperm.xlu1 %2635, %v2243_v56  }
 0x5f8   :  { %v2247_v4 = vpop.permute.xlu1 %2246 }
 0x5f9   :  { %v2254_v15 = vmul.f32 %v2247_v4, %v3610_v19  ;;  %v2255_v36 = vmul.f32 %v2247_v4, %v3614_v38  ;;  %v2256_v17 = vmul.f32 %v2247_v4, %v2183_v26  ;;  %v2257_v37 = vmul.f32 %v2247_v4, %v2185_v33  ;;  %v2651_v19 = vld [vmem:[%s3674_s1] sm:$0xff]  ;;  %v2652_v38 = vld [vmem:[%s3674_s1 + $0x8] sm:$0xff] }
 0x5fc   :  { %v2252_v18 = vpop.permute.xlu0 %2251  ;;  %v2265_v63 = vpop.permute.xlu1 %2264 }
 0x5fd   :  { %v2272_v35 = vadd.f32 %v2265_v63, %v2254_v15  ;;  %v2273_v3 = vadd.f32 %v2265_v63, %v2255_v36  ;;  %v2274_v10 = vadd.f32 %v2265_v63, %v2256_v17  ;;  %v2275_v21 = vadd.f32 %v2265_v63, %v2257_v37 }
 0x5fe   :  { %v2258_v23 = vmul.f32 %v2252_v18, %v3620_v0  ;;  %v2259_v27 = vmul.f32 %v2252_v18, %v3622_v39  ;;  %v2260_v28 = vmul.f32 %v2252_v18, %v2187_v32  ;;  %v2261_v30 = vmul.f32 %v2252_v18, %v2189_v7  ;;  %v2654_v0 = vld [vmem:[%s3674_s1 + $0x18] sm:$0xff] }
 0x5ff   :  { %v2280_v45 = vadd.f32 %v2651_v19, %v2272_v35  ;;  %v2281_v26 = vadd.f32 %v2652_v38, %v2273_v3  ;;  %v2282_v33 = vadd.f32 %v2653_v29, %v2274_v10  ;;  %v2283_v39 = vadd.f32 %v2654_v0, %v2275_v21 }
 0x600   :  { %v2270_v55 = vpop.permute.xlu1 %2269 }
 0x601   :  { %v2276_v52 = vadd.f32 %v2270_v55, %v2258_v23  ;;  %v2277_v34 = vadd.f32 %v2270_v55, %v2259_v27  ;;  %v2278_v41 = vadd.f32 %v2270_v55, %v2260_v28  ;;  %v2279_v32 = vadd.f32 %v2270_v55, %v2261_v30 }
 0x602   :  { %v2288_v42 = vmax.f32 %v2280_v45, 0.0  ;;  %v2289_v62 = vmax.f32 %v2281_v26, 0.0  ;;  %v2290_v7 = vmax.f32 %v2282_v33, 0.0  ;;  %v2291_v43 = vmax.f32 %v2283_v39, 0.0 }
 0x603   :  { %v2284_v6 = vadd.f32 %v2655_v57, %v2276_v52  ;;  %v2285_v46 = vadd.f32 %v2656_v44, %v2277_v34  ;;  %v2286_v2 = vadd.f32 %v2657_v13, %v2278_v41  ;;  %v2287_v48 = vadd.f32 %v2658_v47, %v2279_v32 }
 0x604   :  { %2296 = vst [vmem:[#allocation9] sm:$0xff] %v2288_v42  ;;  %2297 = vst [vmem:[#allocation9 + $0x8] sm:$0xff] %v2289_v62 }
 0x605   :  { %2298 = vst [vmem:[#allocation9 + $0x10] sm:$0xff] %v2290_v7  ;;  %2299 = vst [vmem:[#allocation9 + $0x18] sm:$0xff] %v2291_v43  ;;  %v2292_v40 = vmax.f32 %v2284_v6, 0.0  ;;  %v2293_v50 = vmax.f32 %v2285_v46, 0.0  ;;  %v2294_v31 = vmax.f32 %v2286_v2, 0.0  ;;  %v2295_v53 = vmax.f32 %v2287_v48, 0.0 }
 0x607   :  { %2300 = vst [vmem:[#allocation9 + $0x20] sm:$0xff] %v2292_v40  ;;  %2301 = vst [vmem:[#allocation9 + $0x28] sm:$0xff] %v2293_v50 }
 0x608   :  { %2302 = vst [vmem:[#allocation9 + $0x30] sm:$0xff] %v2294_v31  ;;  %2303 = vst [vmem:[#allocation9 + $0x38] sm:$0xff] %v2295_v53 }
 0x609   :  { %2730 = shalt.err (!%p2727_p5)
}
 0x60a   :  { %s2760_s1 = smov 512   ;;  %s2761_s25 = smov 32  }
 0x60b   :  { %2315 = dma.vmem_to_hbm [thread:$0]  %s2310_s17, 1024, %s3681_s8, [#allocation5], %s2760_s1, %s2760_s1, %s2761_s25  }
 0x60c   :  { %2743 = dma.done.wait [#allocation5], 1024  }
 0x60d   :  { %2744 = vsyncadd [#allocation5], 4294966272 }
 0x60e   :  { %2319 = vsyncpa [#allocation4], 1 }
 0x60f   :  { %2320 = vsyncpa [#allocation7], 1 }
 0x610   :  { %2321 = vsyncpa [#allocation5], 1 }

</bundles_post_ra>
